<compile_context>
chip_gen: v5e
topology: v5e:2x2
jax: 0.10.0
libtpu: 0.0.40
codegen_flags: <defaults>
</compile_context>

<pallas_src>
import functools

import jax
import jax.numpy as jnp
from jax import lax
from jax.experimental import pallas as pl
from jax.experimental.pallas import tpu as pltpu

BN_EPS = 1e-5
LANE = 128            # channel padding target (vreg lane width)
SUBLANE = 16          # spatial (W) padding target (bf16 sublane packing)
ROW_TILE_ROWS = 128   # target TH*W2p rows per tile (f32 acc <= 64 KB at 128 ch)


# ------------------------------- small helpers ------------------------------ #

def _round_up(x, m):
    return (x + m - 1) // m * m


def _vmem_limit_bytes():
    # v5e/v6e have 128 MiB of VMEM per core, v7x has 64 MiB; use ~70% of it
    # and fall back to a known-safe value if the query is unavailable.
    try:
        cap = pltpu.get_tpu_info().vmem_capacity_bytes
        if cap and cap > 0:
            return int(cap * 0.7)
    except Exception:
        pass
    return 32 * 1024 * 1024


def _pad_last(a, c):
    pad = c - a.shape[-1]
    if pad == 0:
        return a
    return jnp.pad(a, [(0, 0)] * (a.ndim - 1) + [(0, pad)])


def _pad2(w, rows, cols):
    return jnp.pad(w, ((0, rows - w.shape[0]), (0, cols - w.shape[1])))


def _fold_bn(bn, c_pad):
    scale = bn["gamma"] / jnp.sqrt(bn["var"] + BN_EPS)
    bias = bn["beta"] - bn["mean"] * scale
    return (_pad_last(scale, c_pad)[None, :].astype(jnp.float32),
            _pad_last(bias, c_pad)[None, :].astype(jnp.float32))


def _pick_th(h2, w2p, n):
    """Largest divisor of h2 keeping the row tile small; prefer >= 2 grid steps."""
    divs = [t for t in range(1, h2 + 1) if h2 % t == 0]
    cands = [t for t in divs if t * w2p <= ROW_TILE_ROWS] or [1]
    th = max(cands)
    if n * (h2 // th) < 2:            # leave work for the 2nd TC / the pipeline
        smaller = [t for t in cands if t <= h2 // 2]
        if smaller:
            th = max(smaller)
    return th


# ------------------------------ fused kernel -------------------------------- #

def _bottleneck_kernel(*refs, H, W, TH, HB, W2p, stride, dil, downsample):
    if downsample:
        (x_ref, w1_ref, s1_ref, b1_ref, w2_ref, s2_ref, b2_ref,
         w3_ref, s3_ref, b3_ref, wd_ref, sd_ref, bd_ref, o_ref, h_scr) = refs
    else:
        (x_ref, w1_ref, s1_ref, b1_ref, w2_ref, s2_ref, b2_ref,
         w3_ref, s3_ref, b3_ref, o_ref, h_scr) = refs

    t = pl.program_id(1)
    Wp = x_ref.shape[2]
    cin_p = x_ref.shape[3]
    width_p = w1_ref.shape[1]
    cout_p = w3_ref.shape[1]

    row0 = pl.multiple_of(t * (TH * stride), TH * stride)

    # ---- conv1 (1x1) + bn1 + relu over the HB-row halo block ----------------
    xblk = x_ref[0, pl.ds(row0, HB), :, :]                    # (HB, Wp, cin_p) bf16
    y1 = jnp.dot(xblk.reshape(HB * Wp, cin_p), w1_ref[...],
                 preferred_element_type=jnp.float32)
    y1 = y1 * s1_ref[...] + b1_ref[...]
    # Positions that correspond to conv2's zero padding (the halo + alignment
    # pad) must be 0; relu(bn1(conv1(0))) is not 0, so mask explicitly.
    gi = row0 + lax.broadcasted_iota(jnp.int32, (HB, Wp, 1), 0)
    gj = lax.broadcasted_iota(jnp.int32, (HB, Wp, 1), 1)
    valid = (gi >= dil) & (gi < H + dil) & (gj >= dil) & (gj < W + dil)
    h = jnp.maximum(y1.reshape(HB, Wp, width_p), 0.0) * valid.astype(jnp.float32)
    h_scr[...] = h.astype(h_scr.dtype)

    # ---- conv2 (3x3, stride, dilation) + bn2 + relu --------------------------
    # The 3 kw taps are concatenated along channels -> one K = 3*width matmul
    # per kh (w2 was pre-reshaped to (3, 3*width_p, width_p) in the wrapper).
    acc = jnp.zeros((TH * W2p, width_p), jnp.float32)
    for kh in range(3):
        taps = []
        for kw in range(3):
            if stride == 1:
                taps.append(h_scr[kh * dil:kh * dil + TH,
                                  kw * dil:kw * dil + W2p, :])
            else:
                taps.append(h_scr[pl.ds(kh * dil, TH, stride=stride),
                                  pl.ds(kw * dil, W2p, stride=stride), :])
        patch = jnp.concatenate(taps, axis=-1)                # (TH, W2p, 3*width_p)
        acc = acc + jnp.dot(patch.reshape(TH * W2p, 3 * width_p), w2_ref[kh],
                            preferred_element_type=jnp.float32)
    y2 = jnp.maximum(acc * s2_ref[...] + b2_ref[...], 0.0).astype(jnp.bfloat16)

    # ---- conv3 (1x1) + bn3 ----------------------------------------------------
    y3 = jnp.dot(y2, w3_ref[...], preferred_element_type=jnp.float32)
    y3 = y3 * s3_ref[...] + b3_ref[...]

    # ---- identity branch: sliced straight from the VMEM-resident input -------
    if stride == 1:
        xid = x_ref[0, pl.ds(row0 + dil, TH), dil:dil + W2p, :]
    else:
        xid = x_ref[0, pl.ds(row0 + dil, TH, stride=stride),
                    pl.ds(dil, W2p, stride=stride), :]
    xid2d = xid.reshape(TH * W2p, cin_p)
    if downsample:
        ident = jnp.dot(xid2d, wd_ref[...], preferred_element_type=jnp.float32)
        ident = ident * sd_ref[...] + bd_ref[...]
    else:
        ident = xid2d.astype(jnp.float32)

    out = jnp.maximum(y3 + ident, 0.0)
    o_ref[...] = out.reshape(1, TH, W2p, cout_p).astype(o_ref.dtype)


# ------------------------------- Bottleneck --------------------------------- #

def bottleneck_forward(x_nchw, params, *, stride=1, dilation=1, downsample=True):
    N, Cin, H, W = x_nchw.shape
    width = params["w1"].shape[1]
    cout = params["w3"].shape[1]
    d, s = dilation, stride

    cin_p = _round_up(Cin, LANE)
    width_p = _round_up(width, LANE)
    cout_p = _round_up(cout, LANE)

    H2 = (H - 1) // s + 1
    W2 = (W - 1) // s + 1
    W2p = _round_up(W2, 8)                       # aligned output columns
    Hp = H + 2 * d
    Wp = _round_up(max(W + 2 * d, (W2p - 1) * s + 2 * d + 1), SUBLANE)

    TH = _pick_th(H2, W2p, N)                    # output rows per grid step
    T = H2 // TH
    HB = (TH - 1) * s + 2 * d + 1                # input rows needed per row tile

    # NCHW -> NHWC, spatial + channel zero-pad + bf16 cast (single pad op).
    x = jnp.transpose(x_nchw, (0, 2, 3, 1))
    xp = jnp.pad(x, ((0, 0), (d, d), (d, Wp - W - d),
                     (0, cin_p - Cin))).astype(jnp.bfloat16)

    w1 = _pad2(params["w1"], cin_p, width_p).astype(jnp.bfloat16)
    # conv2 weights: (3, 3, width, width) HWIO -> (3, 3*width_p, width_p) so the
    # three kw taps share one matmul (K = 3*width_p) per kh.
    w2 = jnp.pad(params["w2"], ((0, 0), (0, 0), (0, width_p - width),
                                (0, width_p - width)))
    w2 = w2.reshape(3, 3 * width_p, width_p).astype(jnp.bfloat16)
    w3 = _pad2(params["w3"], width_p, cout_p).astype(jnp.bfloat16)
    s1, b1 = _fold_bn(params["bn1"], width_p)
    s2, b2 = _fold_bn(params["bn2"], width_p)
    s3, b3 = _fold_bn(params["bn3"], cout_p)

    in_specs = [
        pl.BlockSpec((1, Hp, Wp, cin_p), lambda n, t: (n, 0, 0, 0)),
        pl.BlockSpec((cin_p, width_p), lambda n, t: (0, 0)),
        pl.BlockSpec((1, width_p), lambda n, t: (0, 0)),
        pl.BlockSpec((1, width_p), lambda n, t: (0, 0)),
        pl.BlockSpec((3, 3 * width_p, width_p), lambda n, t: (0, 0, 0)),
        pl.BlockSpec((1, width_p), lambda n, t: (0, 0)),
        pl.BlockSpec((1, width_p), lambda n, t: (0, 0)),
        pl.BlockSpec((width_p, cout_p), lambda n, t: (0, 0)),
        pl.BlockSpec((1, cout_p), lambda n, t: (0, 0)),
        pl.BlockSpec((1, cout_p), lambda n, t: (0, 0)),
    ]
    args = [xp, w1, s1, b1, w2, s2, b2, w3, s3, b3]
    if downsample:
        wd = _pad2(params["wd"], cin_p, cout_p).astype(jnp.bfloat16)
        sd, bd = _fold_bn(params["bn_d"], cout_p)
        in_specs += [
            pl.BlockSpec((cin_p, cout_p), lambda n, t: (0, 0)),
            pl.BlockSpec((1, cout_p), lambda n, t: (0, 0)),
            pl.BlockSpec((1, cout_p), lambda n, t: (0, 0)),
        ]
        args += [wd, sd, bd]
    else:
        assert Cin == cout, "non-downsample Bottleneck requires inplanes == planes*4"

    kernel = functools.partial(
        _bottleneck_kernel, H=H, W=W, TH=TH, HB=HB, W2p=W2p,
        stride=s, dil=d, downsample=downsample)

    out_nhwc = pl.pallas_call(
        kernel,
        grid=(N, T),
        in_specs=in_specs,
        out_specs=pl.BlockSpec((1, TH, W2p, cout_p), lambda n, t: (n, t, 0, 0)),
        out_shape=jax.ShapeDtypeStruct((N, H2, W2p, cout_p), jnp.bfloat16),
        scratch_shapes=[pltpu.VMEM((HB, Wp, width_p), jnp.bfloat16)],
        compiler_params=pltpu.CompilerParams(
            dimension_semantics=("parallel", "parallel"),
            vmem_limit_bytes=_vmem_limit_bytes()),
    )(*args)

    out = out_nhwc[:, :, :W2, :cout]
    return jnp.transpose(out, (0, 3, 1, 2)).astype(x_nchw.dtype)  # NHWC -> NCHW


# ----------------------- deterministic parameter init ----------------------- #

def init_params(key, inplanes, planes, *, groups=1, base_width=64, downsample=True):
    assert groups == 1, "grouped conv3x3 not implemented"
    width = int(planes * (base_width / 64.0)) * groups
    expansion = 4
    cout = planes * expansion
    keys = jax.random.split(key, 8)

    def bn_params(k, c):
        k1, k2, k3, k4 = jax.random.split(k, 4)
        return dict(
            gamma=1.0 + 0.1 * jax.random.normal(k1, (c,), jnp.float32),
            beta=0.1 * jax.random.normal(k2, (c,), jnp.float32),
            mean=0.1 * jax.random.normal(k3, (c,), jnp.float32),
            var=1.0 + 0.1 * jax.random.uniform(k4, (c,), jnp.float32),
        )

    params = dict(
        w1=0.2 * jax.random.normal(keys[0], (inplanes, width), jnp.float32),     # 1x1
        bn1=bn_params(keys[1], width),
        w2=0.2 * jax.random.normal(keys[2], (3, 3, width, width), jnp.float32),  # HWIO
        bn2=bn_params(keys[3], width),
        w3=0.2 * jax.random.normal(keys[4], (width, cout), jnp.float32),          # 1x1
        bn3=bn_params(keys[5], cout),
    )
    if downsample:
        params["wd"] = 0.2 * jax.random.normal(keys[6], (inplanes, cout), jnp.float32)
        params["bn_d"] = bn_params(keys[7], cout)
    return params


# ------------------------------ pure-JAX reference --------------------------- #

def reference_forward(x_nchw, params, *, stride, dilation, downsample):
    x = jnp.transpose(x_nchw, (0, 2, 3, 1)).astype(jnp.float32)
    dn = ("NHWC", "HWIO", "NHWC")

    def bn(y, p):
        return (y - p["mean"]) / jnp.sqrt(p["var"] + BN_EPS) * p["gamma"] + p["beta"]

    out = jax.lax.conv_general_dilated(x, params["w1"][None, None], (1, 1), "VALID",
                                       dimension_numbers=dn)
    out = jax.nn.relu(bn(out, params["bn1"]))
    out = jax.lax.conv_general_dilated(out, params["w2"], (stride, stride),
                                       [(dilation, dilation), (dilation, dilation)],
                                       rhs_dilation=(dilation, dilation),
                                       dimension_numbers=dn)
    out = jax.nn.relu(bn(out, params["bn2"]))
    out = jax.lax.conv_general_dilated(out, params["w3"][None, None], (1, 1), "VALID",
                                       dimension_numbers=dn)
    out = bn(out, params["bn3"])
    if downsample:
        ident = jax.lax.conv_general_dilated(x, params["wd"][None, None],
                                             (stride, stride), "VALID",
                                             dimension_numbers=dn)
        ident = bn(ident, params["bn_d"])
    else:
        ident = x[:, ::stride, ::stride, :]
    return jnp.transpose(jax.nn.relu(out + ident), (0, 3, 1, 2))


# ----------------------------------- main ------------------------------------ #

if __name__ == "__main__":
    key = jax.random.PRNGKey(0)
    kx, kp = jax.random.split(key)

    inplanes, planes = 4, 4          # width = 4, output channels = planes * 4 = 16
    N, H, W = 2, 16, 16
    stride, dilation, downsample = 1, 1, True

    x = jax.random.normal(kx, (N, inplanes, H, W), jnp.float32)  # NCHW like PyTorch
    params = init_params(kp, inplanes, planes, downsample=downsample)

    fwd = jax.jit(functools.partial(bottleneck_forward, stride=stride,
                                    dilation=dilation, downsample=downsample))
    out = jax.block_until_ready(fwd(x, params))
    assert out.shape == (N, planes * 4, H, W), out.shape

    ref = reference_forward(x, params, stride=stride, dilation=dilation,
                            downsample=downsample)
    max_err = float(jnp.max(jnp.abs(out - ref)))
    # bf16 activations/weights/output vs an f32 reference
    assert bool(jnp.allclose(out, ref, atol=5e-2, rtol=5e-2)), \
        f"mismatch vs reference: {max_err}"

    print("KERNEL_OK")
</pallas_src>

<mosaic_0001>
module attributes {stable_mosaic.version = 11 : i64} {
  func.func @_bottleneck_kernel(%arg0: i32, %arg1: i32, %arg2: memref<1x18x32x128xbf16, #tpu.memory_space<vmem>>, %arg3: memref<128x128xbf16, #tpu.memory_space<vmem>>, %arg4: memref<1x128xf32, #tpu.memory_space<vmem>>, %arg5: memref<1x128xf32, #tpu.memory_space<vmem>>, %arg6: memref<3x384x128xbf16, #tpu.memory_space<vmem>>, %arg7: memref<1x128xf32, #tpu.memory_space<vmem>>, %arg8: memref<1x128xf32, #tpu.memory_space<vmem>>, %arg9: memref<128x128xbf16, #tpu.memory_space<vmem>>, %arg10: memref<1x128xf32, #tpu.memory_space<vmem>>, %arg11: memref<1x128xf32, #tpu.memory_space<vmem>>, %arg12: memref<128x128xbf16, #tpu.memory_space<vmem>>, %arg13: memref<1x128xf32, #tpu.memory_space<vmem>>, %arg14: memref<1x128xf32, #tpu.memory_space<vmem>>, %arg15: memref<1x8x16x128xbf16, #tpu.memory_space<vmem>>, %arg16: memref<10x32x128xbf16, #tpu.memory_space<vmem>>) attributes {dimension_semantics = [#tpu.dimension_semantics<parallel>, #tpu.dimension_semantics<parallel>], iteration_bounds = array<i64: 2, 2>, scalar_prefetch = 0 : i64, scratch_operands = 1 : i64, tpu.core_type = #tpu.core_type<tc>, window_params = [{transform_indices = @transform_0, window_bounds = array<i64: 1, 18, 32, 128>}, {pipeline_mode = #tpu.pipeline_mode<synchronous>, transform_indices = @transform_1, window_bounds = array<i64: 128, 128>}, {pipeline_mode = #tpu.pipeline_mode<synchronous>, transform_indices = @transform_2, window_bounds = array<i64: 1, 128>}, {pipeline_mode = #tpu.pipeline_mode<synchronous>, transform_indices = @transform_3, window_bounds = array<i64: 1, 128>}, {pipeline_mode = #tpu.pipeline_mode<synchronous>, transform_indices = @transform_4, window_bounds = array<i64: 3, 384, 128>}, {pipeline_mode = #tpu.pipeline_mode<synchronous>, transform_indices = @transform_5, window_bounds = array<i64: 1, 128>}, {pipeline_mode = #tpu.pipeline_mode<synchronous>, transform_indices = @transform_6, window_bounds = array<i64: 1, 128>}, {pipeline_mode = #tpu.pipeline_mode<synchronous>, transform_indices = @transform_7, window_bounds = array<i64: 128, 128>}, {pipeline_mode = #tpu.pipeline_mode<synchronous>, transform_indices = @transform_8, window_bounds = array<i64: 1, 128>}, {pipeline_mode = #tpu.pipeline_mode<synchronous>, transform_indices = @transform_9, window_bounds = array<i64: 1, 128>}, {pipeline_mode = #tpu.pipeline_mode<synchronous>, transform_indices = @transform_10, window_bounds = array<i64: 128, 128>}, {pipeline_mode = #tpu.pipeline_mode<synchronous>, transform_indices = @transform_11, window_bounds = array<i64: 1, 128>}, {pipeline_mode = #tpu.pipeline_mode<synchronous>, transform_indices = @transform_12, window_bounds = array<i64: 1, 128>}, {transform_indices = @transform_13, window_bounds = array<i64: 1, 8, 16, 128>}]} {
    %c8_i32 = arith.constant 8 : i32
    %0 = arith.muli %arg1, %c8_i32 : i32
    %1 = tpu.assume_multiple %0, 8 : i32
    %c0 = arith.constant 0 : index
    %2 = arith.index_cast %1 : i32 to index
    %c0_0 = arith.constant 0 : index
    %c0_1 = arith.constant 0 : index
    %3 = vector.load %arg2[%c0, %2, %c0_0, %c0_1] : memref<1x18x32x128xbf16, #tpu.memory_space<vmem>>, vector<1x10x32x128xbf16>
    %4 = vector.shape_cast %3 : vector<1x10x32x128xbf16> to vector<10x32x128xbf16>
    %5 = vector.shape_cast %4 : vector<10x32x128xbf16> to vector<320x128xbf16>
    %c0_2 = arith.constant 0 : index
    %c0_3 = arith.constant 0 : index
    %6 = vector.load %arg3[%c0_2, %c0_3] : memref<128x128xbf16, #tpu.memory_space<vmem>>, vector<128x128xbf16>
    %cst = arith.constant dense<0.000000e+00> : vector<320x128xf32>
    %7 = tpu.matmul %5, %6, %cst {dimension_numbers = #tpu.dot_dimension_numbers<[1], [0], [0], [1], [0, 0, 1, 1], [], []>} : vector<320x128xbf16>, vector<128x128xbf16>, vector<320x128xf32> -> vector<320x128xf32>
    %c0_4 = arith.constant 0 : index
    %c0_5 = arith.constant 0 : index
    %8 = vector.load %arg4[%c0_4, %c0_5] : memref<1x128xf32, #tpu.memory_space<vmem>>, vector<1x128xf32>
    %9 = vector.broadcast %8 : vector<1x128xf32> to vector<320x128xf32>
    %10 = arith.mulf %7, %9 : vector<320x128xf32>
    %c0_6 = arith.constant 0 : index
    %c0_7 = arith.constant 0 : index
    %11 = vector.load %arg5[%c0_6, %c0_7] : memref<1x128xf32, #tpu.memory_space<vmem>>, vector<1x128xf32>
    %12 = vector.broadcast %11 : vector<1x128xf32> to vector<320x128xf32>
    %13 = arith.addf %10, %12 : vector<320x128xf32>
    %14 = tpu.iota {dimensions = array<i32: 0>} : vector<10x32x1xi32>
    %15 = vector.broadcast %1 : i32 to vector<10x32x1xi32>
    %16 = arith.addi %15, %14 : vector<10x32x1xi32>
    %17 = tpu.iota {dimensions = array<i32: 1>} : vector<10x32x1xi32>
    %c1_i32 = arith.constant 1 : i32
    %18 = vector.broadcast %c1_i32 : i32 to vector<10x32x1xi32>
    %19 = arith.cmpi sge, %16, %18 : vector<10x32x1xi32>
    %c17_i32 = arith.constant 17 : i32
    %20 = vector.broadcast %c17_i32 : i32 to vector<10x32x1xi32>
    %21 = arith.cmpi slt, %16, %20 : vector<10x32x1xi32>
    %22 = arith.andi %19, %21 : vector<10x32x1xi1>
    %c1_i32_8 = arith.constant 1 : i32
    %23 = vector.broadcast %c1_i32_8 : i32 to vector<10x32x1xi32>
    %24 = arith.cmpi sge, %17, %23 : vector<10x32x1xi32>
    %25 = arith.andi %22, %24 : vector<10x32x1xi1>
    %c17_i32_9 = arith.constant 17 : i32
    %26 = vector.broadcast %c17_i32_9 : i32 to vector<10x32x1xi32>
    %27 = arith.cmpi slt, %17, %26 : vector<10x32x1xi32>
    %28 = arith.andi %25, %27 : vector<10x32x1xi1>
    %29 = vector.shape_cast %13 : vector<320x128xf32> to vector<10x32x128xf32>
    %cst_10 = arith.constant 0.000000e+00 : f32
    %30 = vector.broadcast %cst_10 : f32 to vector<10x32x128xf32>
    %31 = arith.maximumf %29, %30 : vector<10x32x128xf32>
    %32 = arith.extui %28 : vector<10x32x1xi1> to vector<10x32x1xi32>
    %33 = arith.sitofp %32 : vector<10x32x1xi32> to vector<10x32x1xf32>
    %34 = vector.broadcast %33 : vector<10x32x1xf32> to vector<10x32x128xf32>
    %35 = arith.mulf %31, %34 : vector<10x32x128xf32>
    %36 = arith.truncf %35 : vector<10x32x128xf32> to vector<10x32x128xbf16>
    %c0_11 = arith.constant 0 : index
    %c0_12 = arith.constant 0 : index
    %c0_13 = arith.constant 0 : index
    %37 = vector.load %arg16[%c0_11, %c0_12, %c0_13] : memref<10x32x128xbf16, #tpu.memory_space<vmem>>, vector<10x32x128xbf16>
    tpu.vector_store %arg16[%c0_11, %c0_12, %c0_13], %36 {strides = array<i32>} : memref<10x32x128xbf16, #tpu.memory_space<vmem>>, vector<10x32x128xbf16>,
    %cst_14 = arith.constant 0.000000e+00 : f32
    %38 = vector.broadcast %cst_14 : f32 to vector<128x128xf32>
    %c0_15 = arith.constant 0 : index
    %c0_16 = arith.constant 0 : index
    %c0_17 = arith.constant 0 : index
    %39 = vector.load %arg16[%c0_15, %c0_16, %c0_17] : memref<10x32x128xbf16, #tpu.memory_space<vmem>>, vector<8x16x128xbf16>
    %c0_18 = arith.constant 0 : index
    %c1 = arith.constant 1 : index
    %c0_19 = arith.constant 0 : index
    %40 = vector.load %arg16[%c0_18, %c1, %c0_19] : memref<10x32x128xbf16, #tpu.memory_space<vmem>>, vector<8x16x128xbf16>
    %c0_20 = arith.constant 0 : index
    %c2 = arith.constant 2 : index
    %c0_21 = arith.constant 0 : index
    %41 = vector.load %arg16[%c0_20, %c2, %c0_21] : memref<10x32x128xbf16, #tpu.memory_space<vmem>>, vector<8x16x128xbf16>
    %42 = tpu.concatenate %39, %40, %41 in 2 : vector<8x16x128xbf16>, vector<8x16x128xbf16>, vector<8x16x128xbf16> -> vector<8x16x384xbf16>
    %43 = vector.shape_cast %42 : vector<8x16x384xbf16> to vector<128x384xbf16>
    %c0_22 = arith.constant 0 : index
    %c0_23 = arith.constant 0 : index
    %c0_24 = arith.constant 0 : index
    %44 = vector.load %arg6[%c0_22, %c0_23, %c0_24] : memref<3x384x128xbf16, #tpu.memory_space<vmem>>, vector<1x384x128xbf16>
    %45 = vector.shape_cast %44 : vector<1x384x128xbf16> to vector<384x128xbf16>
    %cst_25 = arith.constant dense<0.000000e+00> : vector<128x128xf32>
    %46 = tpu.matmul %43, %45, %cst_25 {dimension_numbers = #tpu.dot_dimension_numbers<[1], [0], [0], [1], [0, 0, 1, 1], [], []>} : vector<128x384xbf16>, vector<384x128xbf16>, vector<128x128xf32> -> vector<128x128xf32>
    %47 = arith.addf %38, %46 : vector<128x128xf32>
    %c1_26 = arith.constant 1 : index
    %c0_27 = arith.constant 0 : index
    %c0_28 = arith.constant 0 : index
    %48 = vector.load %arg16[%c1_26, %c0_27, %c0_28] : memref<10x32x128xbf16, #tpu.memory_space<vmem>>, vector<8x16x128xbf16>
    %c1_29 = arith.constant 1 : index
    %c1_30 = arith.constant 1 : index
    %c0_31 = arith.constant 0 : index
    %49 = vector.load %arg16[%c1_29, %c1_30, %c0_31] : memref<10x32x128xbf16, #tpu.memory_space<vmem>>, vector<8x16x128xbf16>
    %c1_32 = arith.constant 1 : index
    %c2_33 = arith.constant 2 : index
    %c0_34 = arith.constant 0 : index
    %50 = vector.load %arg16[%c1_32, %c2_33, %c0_34] : memref<10x32x128xbf16, #tpu.memory_space<vmem>>, vector<8x16x128xbf16>
    %51 = tpu.concatenate %48, %49, %50 in 2 : vector<8x16x128xbf16>, vector<8x16x128xbf16>, vector<8x16x128xbf16> -> vector<8x16x384xbf16>
    %52 = vector.shape_cast %51 : vector<8x16x384xbf16> to vector<128x384xbf16>
    %c1_35 = arith.constant 1 : index
    %c0_36 = arith.constant 0 : index
    %c0_37 = arith.constant 0 : index
    %53 = vector.load %arg6[%c1_35, %c0_36, %c0_37] : memref<3x384x128xbf16, #tpu.memory_space<vmem>>, vector<1x384x128xbf16>
    %54 = vector.shape_cast %53 : vector<1x384x128xbf16> to vector<384x128xbf16>
    %cst_38 = arith.constant dense<0.000000e+00> : vector<128x128xf32>
    %55 = tpu.matmul %52, %54, %cst_38 {dimension_numbers = #tpu.dot_dimension_numbers<[1], [0], [0], [1], [0, 0, 1, 1], [], []>} : vector<128x384xbf16>, vector<384x128xbf16>, vector<128x128xf32> -> vector<128x128xf32>
    %56 = arith.addf %47, %55 : vector<128x128xf32>
    %c2_39 = arith.constant 2 : index
    %c0_40 = arith.constant 0 : index
    %c0_41 = arith.constant 0 : index
    %57 = vector.load %arg16[%c2_39, %c0_40, %c0_41] : memref<10x32x128xbf16, #tpu.memory_space<vmem>>, vector<8x16x128xbf16>
    %c2_42 = arith.constant 2 : index
    %c1_43 = arith.constant 1 : index
    %c0_44 = arith.constant 0 : index
    %58 = vector.load %arg16[%c2_42, %c1_43, %c0_44] : memref<10x32x128xbf16, #tpu.memory_space<vmem>>, vector<8x16x128xbf16>
    %c2_45 = arith.constant 2 : index
    %c2_46 = arith.constant 2 : index
    %c0_47 = arith.constant 0 : index
    %59 = vector.load %arg16[%c2_45, %c2_46, %c0_47] : memref<10x32x128xbf16, #tpu.memory_space<vmem>>, vector<8x16x128xbf16>
    %60 = tpu.concatenate %57, %58, %59 in 2 : vector<8x16x128xbf16>, vector<8x16x128xbf16>, vector<8x16x128xbf16> -> vector<8x16x384xbf16>
    %61 = vector.shape_cast %60 : vector<8x16x384xbf16> to vector<128x384xbf16>
    %c2_48 = arith.constant 2 : index
    %c0_49 = arith.constant 0 : index
    %c0_50 = arith.constant 0 : index
    %62 = vector.load %arg6[%c2_48, %c0_49, %c0_50] : memref<3x384x128xbf16, #tpu.memory_space<vmem>>, vector<1x384x128xbf16>
    %63 = vector.shape_cast %62 : vector<1x384x128xbf16> to vector<384x128xbf16>
    %cst_51 = arith.constant dense<0.000000e+00> : vector<128x128xf32>
    %64 = tpu.matmul %61, %63, %cst_51 {dimension_numbers = #tpu.dot_dimension_numbers<[1], [0], [0], [1], [0, 0, 1, 1], [], []>} : vector<128x384xbf16>, vector<384x128xbf16>, vector<128x128xf32> -> vector<128x128xf32>
    %65 = arith.addf %56, %64 : vector<128x128xf32>
    %c0_52 = arith.constant 0 : index
    %c0_53 = arith.constant 0 : index
    %66 = vector.load %arg7[%c0_52, %c0_53] : memref<1x128xf32, #tpu.memory_space<vmem>>, vector<1x128xf32>
    %67 = vector.broadcast %66 : vector<1x128xf32> to vector<128x128xf32>
    %68 = arith.mulf %65, %67 : vector<128x128xf32>
    %c0_54 = arith.constant 0 : index
    %c0_55 = arith.constant 0 : index
    %69 = vector.load %arg8[%c0_54, %c0_55] : memref<1x128xf32, #tpu.memory_space<vmem>>, vector<1x128xf32>
    %70 = vector.broadcast %69 : vector<1x128xf32> to vector<128x128xf32>
    %71 = arith.addf %68, %70 : vector<128x128xf32>
    %cst_56 = arith.constant 0.000000e+00 : f32
    %72 = vector.broadcast %cst_56 : f32 to vector<128x128xf32>
    %73 = arith.maximumf %71, %72 : vector<128x128xf32>
    %74 = arith.truncf %73 : vector<128x128xf32> to vector<128x128xbf16>
    %c0_57 = arith.constant 0 : index
    %c0_58 = arith.constant 0 : index
    %75 = vector.load %arg9[%c0_57, %c0_58] : memref<128x128xbf16, #tpu.memory_space<vmem>>, vector<128x128xbf16>
    %cst_59 = arith.constant dense<0.000000e+00> : vector<128x128xf32>
    %76 = tpu.matmul %74, %75, %cst_59 {dimension_numbers = #tpu.dot_dimension_numbers<[1], [0], [0], [1], [0, 0, 1, 1], [], []>} : vector<128x128xbf16>, vector<128x128xbf16>, vector<128x128xf32> -> vector<128x128xf32>
    %c0_60 = arith.constant 0 : index
    %c0_61 = arith.constant 0 : index
    %77 = vector.load %arg10[%c0_60, %c0_61] : memref<1x128xf32, #tpu.memory_space<vmem>>, vector<1x128xf32>
    %78 = vector.broadcast %77 : vector<1x128xf32> to vector<128x128xf32>
    %79 = arith.mulf %76, %78 : vector<128x128xf32>
    %c0_62 = arith.constant 0 : index
    %c0_63 = arith.constant 0 : index
    %80 = vector.load %arg11[%c0_62, %c0_63] : memref<1x128xf32, #tpu.memory_space<vmem>>, vector<1x128xf32>
    %81 = vector.broadcast %80 : vector<1x128xf32> to vector<128x128xf32>
    %82 = arith.addf %79, %81 : vector<128x128xf32>
    %c1_i32_64 = arith.constant 1 : i32
    %83 = arith.addi %1, %c1_i32_64 : i32
    %c0_65 = arith.constant 0 : index
    %84 = arith.index_cast %83 : i32 to index
    %c1_66 = arith.constant 1 : index
    %c0_67 = arith.constant 0 : index
    %85 = vector.load %arg2[%c0_65, %84, %c1_66, %c0_67] : memref<1x18x32x128xbf16, #tpu.memory_space<vmem>>, vector<1x8x16x128xbf16>
    %86 = vector.shape_cast %85 : vector<1x8x16x128xbf16> to vector<8x16x128xbf16>
    %87 = vector.shape_cast %86 : vector<8x16x128xbf16> to vector<128x128xbf16>
    %c0_68 = arith.constant 0 : index
    %c0_69 = arith.constant 0 : index
    %88 = vector.load %arg12[%c0_68, %c0_69] : memref<128x128xbf16, #tpu.memory_space<vmem>>, vector<128x128xbf16>
    %cst_70 = arith.constant dense<0.000000e+00> : vector<128x128xf32>
    %89 = tpu.matmul %87, %88, %cst_70 {dimension_numbers = #tpu.dot_dimension_numbers<[1], [0], [0], [1], [0, 0, 1, 1], [], []>} : vector<128x128xbf16>, vector<128x128xbf16>, vector<128x128xf32> -> vector<128x128xf32>
    %c0_71 = arith.constant 0 : index
    %c0_72 = arith.constant 0 : index
    %90 = vector.load %arg13[%c0_71, %c0_72] : memref<1x128xf32, #tpu.memory_space<vmem>>, vector<1x128xf32>
    %91 = vector.broadcast %90 : vector<1x128xf32> to vector<128x128xf32>
    %92 = arith.mulf %89, %91 : vector<128x128xf32>
    %c0_73 = arith.constant 0 : index
    %c0_74 = arith.constant 0 : index
    %93 = vector.load %arg14[%c0_73, %c0_74] : memref<1x128xf32, #tpu.memory_space<vmem>>, vector<1x128xf32>
    %94 = vector.broadcast %93 : vector<1x128xf32> to vector<128x128xf32>
    %95 = arith.addf %92, %94 : vector<128x128xf32>
    %96 = arith.addf %82, %95 : vector<128x128xf32>
    %cst_75 = arith.constant 0.000000e+00 : f32
    %97 = vector.broadcast %cst_75 : f32 to vector<128x128xf32>
    %98 = arith.maximumf %96, %97 : vector<128x128xf32>
    %99 = vector.shape_cast %98 : vector<128x128xf32> to vector<1x8x16x128xf32>
    %100 = arith.truncf %99 : vector<1x8x16x128xf32> to vector<1x8x16x128xbf16>
    %c0_76 = arith.constant 0 : index
    %c0_77 = arith.constant 0 : index
    %c0_78 = arith.constant 0 : index
    %c0_79 = arith.constant 0 : index
    %101 = vector.load %arg15[%c0_76, %c0_77, %c0_78, %c0_79] : memref<1x8x16x128xbf16, #tpu.memory_space<vmem>>, vector<1x8x16x128xbf16>
    tpu.vector_store %arg15[%c0_76, %c0_77, %c0_78, %c0_79], %100 {strides = array<i32>} : memref<1x8x16x128xbf16, #tpu.memory_space<vmem>>, vector<1x8x16x128xbf16>,
    return
  }
  func.func @transform_0(%arg0: i32, %arg1: i32) -> (i32, i32, i32, i32) {
    %c0_i32 = arith.constant 0 : i32
    %c0_i32_0 = arith.constant 0 : i32
    %c0_i32_1 = arith.constant 0 : i32
    %c0_i32_2 = arith.constant 0 : i32
    return %arg0, %c0_i32, %c0_i32_0, %c0_i32_1 : i32, i32, i32, i32
  }
  func.func @transform_1(%arg0: i32, %arg1: i32) -> (i32, i32) {
    %c0_i32 = arith.constant 0 : i32
    %c0_i32_0 = arith.constant 0 : i32
    %c0_i32_1 = arith.constant 0 : i32
    return %c0_i32, %c0_i32_0 : i32, i32
  }
  func.func @transform_2(%arg0: i32, %arg1: i32) -> (i32, i32) {
    %c0_i32 = arith.constant 0 : i32
    %c0_i32_0 = arith.constant 0 : i32
    %c0_i32_1 = arith.constant 0 : i32
    return %c0_i32, %c0_i32_0 : i32, i32
  }
  func.func @transform_3(%arg0: i32, %arg1: i32) -> (i32, i32) {
    %c0_i32 = arith.constant 0 : i32
    %c0_i32_0 = arith.constant 0 : i32
    %c0_i32_1 = arith.constant 0 : i32
    return %c0_i32, %c0_i32_0 : i32, i32
  }
  func.func @transform_4(%arg0: i32, %arg1: i32) -> (i32, i32, i32) {
    %c0_i32 = arith.constant 0 : i32
    %c0_i32_0 = arith.constant 0 : i32
    %c0_i32_1 = arith.constant 0 : i32
    %c0_i32_2 = arith.constant 0 : i32
    return %c0_i32, %c0_i32_0, %c0_i32_1 : i32, i32, i32
  }
  func.func @transform_5(%arg0: i32, %arg1: i32) -> (i32, i32) {
    %c0_i32 = arith.constant 0 : i32
    %c0_i32_0 = arith.constant 0 : i32
    %c0_i32_1 = arith.constant 0 : i32
    return %c0_i32, %c0_i32_0 : i32, i32
  }
  func.func @transform_6(%arg0: i32, %arg1: i32) -> (i32, i32) {
    %c0_i32 = arith.constant 0 : i32
    %c0_i32_0 = arith.constant 0 : i32
    %c0_i32_1 = arith.constant 0 : i32
    return %c0_i32, %c0_i32_0 : i32, i32
  }
  func.func @transform_7(%arg0: i32, %arg1: i32) -> (i32, i32) {
    %c0_i32 = arith.constant 0 : i32
    %c0_i32_0 = arith.constant 0 : i32
    %c0_i32_1 = arith.constant 0 : i32
    return %c0_i32, %c0_i32_0 : i32, i32
  }
  func.func @transform_8(%arg0: i32, %arg1: i32) -> (i32, i32) {
    %c0_i32 = arith.constant 0 : i32
    %c0_i32_0 = arith.constant 0 : i32
    %c0_i32_1 = arith.constant 0 : i32
    return %c0_i32, %c0_i32_0 : i32, i32
  }
  func.func @transform_9(%arg0: i32, %arg1: i32) -> (i32, i32) {
    %c0_i32 = arith.constant 0 : i32
    %c0_i32_0 = arith.constant 0 : i32
    %c0_i32_1 = arith.constant 0 : i32
    return %c0_i32, %c0_i32_0 : i32, i32
  }
  func.func @transform_10(%arg0: i32, %arg1: i32) -> (i32, i32) {
    %c0_i32 = arith.constant 0 : i32
    %c0_i32_0 = arith.constant 0 : i32
    %c0_i32_1 = arith.constant 0 : i32
    return %c0_i32, %c0_i32_0 : i32, i32
  }
  func.func @transform_11(%arg0: i32, %arg1: i32) -> (i32, i32) {
    %c0_i32 = arith.constant 0 : i32
    %c0_i32_0 = arith.constant 0 : i32
    %c0_i32_1 = arith.constant 0 : i32
    return %c0_i32, %c0_i32_0 : i32, i32
  }
  func.func @transform_12(%arg0: i32, %arg1: i32) -> (i32, i32) {
    %c0_i32 = arith.constant 0 : i32
    %c0_i32_0 = arith.constant 0 : i32
    %c0_i32_1 = arith.constant 0 : i32
    return %c0_i32, %c0_i32_0 : i32, i32
  }
  func.func @transform_13(%arg0: i32, %arg1: i32) -> (i32, i32, i32, i32) {
    %c0_i32 = arith.constant 0 : i32
    %c0_i32_0 = arith.constant 0 : i32
    %c0_i32_1 = arith.constant 0 : i32
    return %arg0, %arg1, %c0_i32, %c0_i32_0 : i32, i32, i32, i32
  }
}

</mosaic_0001>

<bundles_post_ra>
// kernel: bottleneck_forward.1
= control target key start
LH: loop header
LB: loop body
LE: loop exit
PB: predicated region body
PF: predicated region fallthrough
CT: control target
= control target key end

     0   :  { %s5173_s25 = smov 0   ;;  %s5175_s26 = smov 0   ;;  %s6552_s0 = inlined_call_operand.vmem [shape: bf16[2,18,32,128], index: 0, kind: input, shape index: {}]   ;;  %s6553_s1 = inlined_call_operand.vmem [shape: bf16[128,128], index: 1, kind: input, shape index: {}]   ;;  %s6554_s2 = inlined_call_operand.vmem [shape: f32[1,128], index: 2, kind: input, shape index: {}]   ;;  %s6555_s3 = inlined_call_operand.vmem [shape: f32[1,128], index: 3, kind: input, shape index: {}]   ;;  %s6556_s4 = inlined_call_operand.vmem [shape: bf16[3,384,128], index: 4, kind: input, shape index: {}]   ;;  %s6557_s5 = inlined_call_operand.vmem [shape: f32[1,128], index: 5, kind: input, shape index: {}]   ;;  %s6558_s6 = inlined_call_operand.vmem [shape: f32[1,128], index: 6, kind: input, shape index: {}]   ;;  %s6559_s7 = inlined_call_operand.vmem [shape: bf16[128,128], index: 7, kind: input, shape index: {}]   ;;  %s6560_s8 = inlined_call_operand.vmem [shape: f32[1,128], index: 8, kind: input, shape index: {}]   ;;  %s6561_s9 = inlined_call_operand.vmem [shape: f32[1,128], index: 9, kind: input, shape index: {}]   ;;  %s6562_s10 = inlined_call_operand.vmem [shape: bf16[128,128], index: 10, kind: input, shape index: {}]   ;;  %s6563_s11 = inlined_call_operand.vmem [shape: f32[1,128], index: 11, kind: input, shape index: {}]   ;;  %s6564_s12 = inlined_call_operand.vmem [shape: f32[1,128], index: 12, kind: input, shape index: {}]   ;;  %s6565_s13 = inlined_call_operand.vmem [shape: bf16[2,16,16,128], index: 13, kind: output, shape index: {}]  }
   0x1   :  { %s5177_s27 = smov 0   ;;  %s5179_s28 = smov 0  }
   0x2   :  { %s5181_s29 = smov 0  }
   0x3 LB: > { %s32_s30 = sadd.s32 1, %s5092_s27  ;;  %s35_s14 = sadd.s32 1, %s5096_s28  ;;  %s5100_s29 = sphi %s5181_s29, %s23_s29   ;;  %s5096_s28 = sphi %s5179_s28, %s6604_s28   ;;  %s5092_s27 = sphi %s5177_s27, %s6603_s27   ;;  %s5088_s26 = sphi %s5175_s26, %s6602_s26   ;;  %s5084_s25 = sphi %s5173_s25, %s6601_s25  }
   0x4   : > { %p33_p0 = scmp.ge.s32.totalorder %s32_s30, 2  ;;  %p3884_p1 = scmp.ge.s32.totalorder %s5100_s29, 1 }
   0x5   : > { %p401_p2 = scmp.lt.s32.totalorder %s5100_s29, 5 }
   0x6   : > { %s6606_s30 = smov (%p33_p0, %s32_s30), 0  ;;  %s6608_s14 = smov (!%p33_p0, %s35_s14), %s5096_s28 }
   0x7   : > { %6570 = sst [smem:[#allocation3_spill]] %s6606_s30  ;;  %p402_p3 = pnand %p3884_p1, %p401_p2 }
   0x8   : > { %p37_p4 = scmp.ge.s32.totalorder %s6608_s14, 2 }
   0x9   : > { %405 = sbr.rel (%p402_p3) target bundleno = 1133 (0x46d), region = 72 }
   0xa   : > { %s6610_s14 = smov (%p37_p4, %s6608_s14), 0 }
   0xb   : > { %6571 = sst [smem:[#allocation4_spill]] %s6610_s14 }
   0xe   : > { %v4540_v0 = vld [vmem:[%s6553_s1 + $0x38] sm:$0xff]  ;;  %v4539_v1 = vld [vmem:[%s6553_s1 + $0x30] sm:$0xff]  ;;  %v4538_v2 = vld [vmem:[%s6553_s1 + $0x28] sm:$0xff]  ;;  %p450_p5 = scmp.lt.s32.totalorder %s5088_s26, 1  ;;  %s4512_s23 = sshll.u32 %s5084_s25, 7  ;;  %v901_v19 = vlaneseq  ;;  %v6566_v37 = vmov 0.0  }
   0xf   : > { %694 = vmatpush.bf16.msra.mxu0 %v4540_v0  ;;  %v4537_v3 = vld [vmem:[%s6553_s1 + $0x20] sm:$0xff]  ;;  %v4536_v4 = vld [vmem:[%s6553_s1 + $0x18] sm:$0xff]  ;;  %v4535_v5 = vld [vmem:[%s6553_s1 + $0x10] sm:$0xff]  ;;  %s5256_s20 = sshll.u32 %s5084_s25, 3 }
  0x10   : > { %s6612_s26 = smov (!%p450_p5, %s5088_s26), 1  ;;  %v4534_v6 = vld [vmem:[%s6553_s1 + $0x8] sm:$0xff]  ;;  %v4533_v7 = vld [vmem:[%s6553_s1] sm:$0xff]  ;;  %v4572_v16 = vld [vmem:[%s6556_s4 + $0xf8] sm:$0xff]  ;;  %v5268_v24 = vstv %s5256_s20  ;;  %v5270_v25 = vshrl.u32 %v901_v19, 7  ;;  %p458_p6 = scmp.lt.s32.totalorder %s5256_s20, 15 }
  0x11   : > { %s5009_s17 = smul.u32 288, %s6612_s26  ;;  %2036 = vmatpush.bf16.msra.mxu1 %v4572_v16  ;;  %4985 = vmatpush.bf16.msra.mxu2 %v4572_v16  ;;  %v4571_v17 = vld [vmem:[%s6556_s4 + $0xf0] sm:$0xff]  ;;  %v4570_v18 = vld [vmem:[%s6556_s4 + $0xe8] sm:$0xff]  ;;  %v4569_v20 = vld [vmem:[%s6556_s4 + $0xe0] sm:$0xff]  ;;  %vm906_vm0 = vcmp.ge.s32.totalorder %v5268_v24, 1  ;;  %vm916_vm1 = vcmp.lt.s32.totalorder %v5268_v24, 17 }
  0x12   : > { %4986 = vmatpush.bf16.msra.mxu3 %v4572_v16  ;;  %v5264_v21 = vld [vmem:[%s6554_s2] ss:$0 sm:$0xff]  ;;  %v4568_v26 = vld [vmem:[%s6556_s4 + $0xd8] sm:$0xff]  ;;  %vm5283_vm2 = vmand %vm906_vm0, %vm916_vm1  ;;  %vm936_vm3 = vcmp.ge.s32.totalorder %v5270_v25, 1  ;;  %v5312_v47 = vadd.s32 16, %v5270_v25  ;;  %v892_v58 = vadd.s32 1, %v5268_v24 }
  0x13   : > { %695 = vmatpush.bf16.msra.mxu0 %v4539_v1  ;;  %s454_s22 = scalar_lea.vmem %s6552_s0, %s5009_s17  ;;  %v5279_v28 = vld [vmem:[%s6555_s3] ss:$0 sm:$0xff]  ;;  %v4567_v30 = vld [vmem:[%s6556_s4 + $0xd0] sm:$0xff]  ;;  %vm940_vm4 = vmand %vm5283_vm2, %vm936_vm3  ;;  %v4006_v39 = vsel %vm5283_vm2, 1.0, %v6566_v37  ;;  %s6614_s20 = smov (!%p458_p6, %s5256_s20), 15 }
  0x14   : > { %s5236_s30 = scalar_lea.vmem %s454_s22, %s4512_s23  ;;  %v4566_v34 = vld [vmem:[%s6556_s4 + $0xc8] sm:$0xff]  ;;  %v4005_v38 = vsel %vm940_vm4, 1.0, %v6566_v37  ;;  %v4565_v41 = vld [vmem:[%s6556_s4 + $0xc0] sm:$0xff]  ;;  %6574 = vst [vmem:[#allocation5_spill] sm:$0xff] %v5312_v47  ;;  %vm982_vm5 = vcmp.lt.s32.totalorder %v5312_v47, 17  ;;  %vm907_vm7 = vcmp.ge.s32.totalorder %v892_v58, 1 }
  0x15   : > { %v4513_v8 = vld [vmem:[%s5236_s30] sm:$0xff]  ;;  %v4514_v9 = vld [vmem:[%s5236_s30 + $0x8] sm:$0xff]  ;;  %v4515_v10 = vld [vmem:[%s5236_s30 + $0x10] sm:$0xff]  ;;  %2037 = vmatpush.bf16.msra.mxu1 %v4571_v17  ;;  %4987 = vmatpush.bf16.msra.mxu2 %v4571_v17  ;;  %vm917_vm8 = vcmp.lt.s32.totalorder %v892_v58, 17  ;;  %s3887_s23 = sshll.u32 %s6614_s20, 1  ;;  %s3888_s24 = sshll.u32 %s6612_s26, 5 }
  0x16   : > { %v4516_v11 = vld [vmem:[%s5236_s30 + $0x18] sm:$0xff]  ;;  %v4517_v12 = vld [vmem:[%s5236_s30 + $0x20] sm:$0xff]  ;;  %v4518_v13 = vld [vmem:[%s5236_s30 + $0x28] sm:$0xff]  ;;  %4988 = vmatpush.bf16.msra.mxu3 %v4571_v17  ;;  %s462_s25 = sadd.s32 %s3888_s24, %s3887_s23 }
  0x17   : > { %696 = vmatpush.bf16.msra.mxu0 %v4538_v2  ;;  %v4519_v14 = vld [vmem:[%s5236_s30 + $0x30] sm:$0xff]  ;;  %v4520_v15 = vld [vmem:[%s5236_s30 + $0x38] sm:$0xff]  ;;  %v4521_v22 = vld [vmem:[%s5236_s30 + $0x40] sm:$0xff]  ;;  %s3889_s14 = sshll.u32 %s462_s25, 2 }
  0x18   : > { %v4522_v44 = vld [vmem:[%s5236_s30 + $0x48] sm:$0xff]  ;;  %vm986_vm6 = vmand %vm5283_vm2, %vm982_vm5  ;;  %v4523_v59 = vld [vmem:[%s5236_s30 + $0x50] sm:$0xff]  ;;  %s6471_s16 = scalar_lea.vmem %s6565_s13, %s3889_s14 }
  0x19   : > { %2038 = vmatpush.bf16.msra.mxu1 %v4570_v18  ;;  %4989 = vmatpush.bf16.msra.mxu2 %v4570_v18  ;;  %v4007_v54 = vsel %vm986_vm6, 1.0, %v6566_v37  ;;  %vm5328_vm9 = vmand %vm907_vm7, %vm917_vm8  ;;  %v4597_v47 = vld [vmem:[%s6556_s4 + $0x1c0] sm:$0xff] }
  0x1a   : > { %4990 = vmatpush.bf16.msra.mxu3 %v4570_v18  ;;  %vm944_vm10 = vmand %vm5328_vm9, %vm936_vm3 }
  0x1b   : > { %697 = vmatpush.bf16.msra.mxu0 %v4537_v3  ;;  %vm990_vm11 = vmand %vm5328_vm9, %vm982_vm5 }
  0x1d   : > { %2039 = vmatpush.bf16.msra.mxu1 %v4569_v20  ;;  %4991 = vmatpush.bf16.msra.mxu2 %v4569_v20 }
  0x1e   : > { %4992 = vmatpush.bf16.msra.mxu3 %v4569_v20 }
  0x1f   : > { %698 = vmatpush.bf16.msra.mxu0 %v4536_v4 }
  0x21   : > { %2040 = vmatpush.bf16.msra.mxu1 %v4568_v26  ;;  %4993 = vmatpush.bf16.msra.mxu2 %v4568_v26 }
  0x22   : > { %4994 = vmatpush.bf16.msra.mxu3 %v4568_v26  ;;  %v4010_v26 = vsel %vm990_vm11, 1.0, %v6566_v37 }
  0x23   : > { %699 = vmatpush.bf16.msra.mxu0 %v4535_v5  ;;  %v4008_v5 = vsel %vm944_vm10, 1.0, %v6566_v37 }
  0x25   : > { %2041 = vmatpush.bf16.msra.mxu1 %v4567_v30  ;;  %4995 = vmatpush.bf16.msra.mxu2 %v4567_v30 }
  0x26   : > { %4996 = vmatpush.bf16.msra.mxu3 %v4567_v30 }
  0x27   : > { %700 = vmatpush.bf16.msra.mxu0 %v4534_v6  ;;  %v4009_v6 = vsel %vm5328_vm9, 1.0, %v6566_v37 }
  0x29   : > { %2042 = vmatpush.bf16.msra.mxu1 %v4566_v34  ;;  %4997 = vmatpush.bf16.msra.mxu2 %v4566_v34 }
  0x2a   : > { %4998 = vmatpush.bf16.msra.mxu3 %v4566_v34 }
  0x2b   : > { %701 = vmatpush.bf16.msra.mxu0 %v4533_v7 }
  0x2d   : > { %2043 = vmatpush.bf16.msra.mxu1 %v4565_v41  ;;  %4999 = vmatpush.bf16.msra.mxu2 %v4565_v41 }
  0x2e   : > { %702 = vmatmul.bf16.vlgmr.msra.gmra.mxu0 %v4513_v8  ;;  %5000 = vmatpush.bf16.msra.mxu3 %v4565_v41 }
  0x3e   : > { %707 = vmatmul.bf16.gmra.mxu0 %v4514_v9 }
  0x4e   : > { %712 = vmatmul.bf16.gmra.mxu0 %v4515_v10  ;;  %v4524_v10 = vld [vmem:[%s5236_s30 + $0x58] sm:$0xff] }
  0x5e   : > { %717 = vmatmul.bf16.gmra.mxu0 %v4516_v11 }
  0x6e   : > { %722 = vmatmul.bf16.gmra.mxu0 %v4517_v12 }
  0x7e   : > { %727 = vmatmul.bf16.gmra.mxu0 %v4518_v13 }
  0x8e   : > { %732 = vmatmul.bf16.gmra.mxu0 %v4519_v14 }
  0x9e   : > { %737 = vmatmul.bf16.gmra.mxu0 %v4520_v15 }
  0xab   : > { %v703_v23 = vpop.f32.mrf.mxu0 }
  0xac   : > { %v807_v27 = vmul.f32 %v5264_v21, %v703_v23 }
  0xae   : > { %742 = vmatmul.bf16.gmra.mxu0 %v4521_v22  ;;  %v851_v31 = vadd.f32 %v5279_v28, %v807_v27 }
  0xb0   : > { %v1024_v35 = vmax.f32 %v851_v31, 0.0  ;;  %v893_v31 = vadd.s32 2, %v5268_v24 }
  0xb2   : > { %v1144_v42 = vmul.f32 %v4005_v38, %v1024_v35  ;;  %v4548_v35 = vld [vmem:[%s6556_s4 + $0x38] sm:$0xff]  ;;  %vm908_vm12 = vcmp.ge.s32.totalorder %v893_v31, 1  ;;  %vm918_vm13 = vcmp.lt.s32.totalorder %v893_v31, 17 }
  0xb3   : > { %v705_v32 = vpop.f32.mrf.mxu0  ;;  %2327 = vmatpush.bf16.msrb.mxu1 %v4548_v35  ;;  %vm5367_vm14 = vmand %vm908_vm12, %vm918_vm13 }
  0xb4   : > { %v808_v33 = vmul.f32 %v5264_v21, %v705_v32  ;;  %v4525_v32 = vld [vmem:[%s5236_s30 + $0x60] sm:$0xff]  ;;  %vm948_vm15 = vmand %vm5367_vm14, %vm936_vm3 }
  0xb5   : > { %vm994_vm0 = vmand %vm5367_vm14, %vm982_vm5 }
  0xb6   : > { %v852_v36 = vadd.f32 %v5279_v28, %v808_v33 }
  0xb8   : > { %v1025_v40 = vmax.f32 %v852_v36, 0.0 }
  0xba   : > { %v1145_v43 = vmul.f32 %v4006_v39, %v1025_v40  ;;  %v4547_v39 = vld [vmem:[%s6556_s4 + $0x30] sm:$0xff] }
  0xbb   : > { %v708_v45 = vpop.f32.mrf.mxu0  ;;  %2328 = vmatpush.bf16.msrb.mxu1 %v4547_v39 }
  0xbc   : > { %v5309_v46 = vpack.c.bf16 %v1145_v43, %v1144_v42  ;;  %v809_v48 = vmul.f32 %v5264_v21, %v708_v45  ;;  %v4546_v43 = vld [vmem:[%s6556_s4 + $0x28] sm:$0xff] }
  0xbe   : > { %4634 = vst [vmem:[#allocation2] sm:$0xff] %v5309_v46   ;;  %747 = vmatmul.bf16.gmra.mxu0 %v4522_v44  ;;  %v853_v49 = vadd.f32 %v5279_v28, %v809_v48  ;;  %v4011_v48 = vsel %vm948_vm15, 1.0, %v6566_v37 }
  0xbf   : > { %2329 = vmatpush.bf16.msrb.mxu1 %v4546_v43 }
  0xc0   : > { %v1026_v52 = vmax.f32 %v853_v49, 0.0  ;;  %v4012_v49 = vsel %vm5367_vm14, 1.0, %v6566_v37 }
  0xc2   : > { %v1146_v56 = vmul.f32 %v4007_v54, %v1026_v52  ;;  %v4526_v54 = vld [vmem:[%s5236_s30 + $0x68] sm:$0xff] }
  0xc3   : > { %v710_v50 = vpop.f32.mrf.mxu0 }
  0xc4   : > { %v810_v51 = vmul.f32 %v5264_v21, %v710_v50 }
  0xc6   : > { %v854_v53 = vadd.f32 %v5279_v28, %v810_v51  ;;  %v4545_v51 = vld [vmem:[%s6556_s4 + $0x20] sm:$0xff] }
  0xc7   : > { %2330 = vmatpush.bf16.msrb.mxu1 %v4545_v51 }
  0xc8   : > { %v1027_v55 = vmax.f32 %v854_v53, 0.0 }
  0xca   : > { %v1147_v57 = vmul.f32 0.0, %v1027_v55 }
  0xcb   : > { %v713_v60 = vpop.f32.mrf.mxu0 }
  0xcc   : > { %v4638_v61 = vpack.c.bf16 %v1147_v57, %v1146_v56  ;;  %v811_v62 = vmul.f32 %v5264_v21, %v713_v60  ;;  %v4544_v57 = vld [vmem:[%s6556_s4 + $0x18] sm:$0xff] }
  0xcd   : > { %2331 = vmatpush.bf16.msrb.mxu1 %v4544_v57 }
  0xce   : > { %4866 = vst [vmem:[#allocation2 + $0x38] sm:$0xff] %v4638_v61   ;;  %752 = vmatmul.bf16.gmra.mxu0 %v4523_v59  ;;  %v855_v0 = vadd.f32 %v5279_v28, %v811_v62  ;;  %v4543_v62 = vld [vmem:[%s6556_s4 + $0x10] sm:$0xff] }
  0xd0   : > { %v1028_v3 = vmax.f32 %v855_v0, 0.0 }
  0xd1   : > { %2332 = vmatpush.bf16.msrb.mxu1 %v4543_v62  ;;  %v4579_v62 = vld [vmem:[%s6556_s4 + $0x130] sm:$0xff] }
  0xd2   : > { %v1148_v8 = vmul.f32 %v4008_v5, %v1028_v3  ;;  %v4542_v3 = vld [vmem:[%s6556_s4 + $0x8] sm:$0xff] }
  0xd3   : > { %v715_v1 = vpop.f32.mrf.mxu0 }
  0xd4   : > { %v812_v2 = vmul.f32 %v5264_v21, %v715_v1 }
  0xd5   : > { %2333 = vmatpush.bf16.msrb.mxu1 %v4542_v3  ;;  %v4578_v3 = vld [vmem:[%s6556_s4 + $0x128] sm:$0xff] }
  0xd6   : > { %v856_v4 = vadd.f32 %v5279_v28, %v812_v2 }
  0xd8   : > { %v1029_v7 = vmax.f32 %v856_v4, 0.0 }
  0xda   : > { %v1149_v9 = vmul.f32 %v4009_v6, %v1029_v7  ;;  %v4013_v6 = vsel %vm994_vm0, 1.0, %v6566_v37 }
  0xdb   : > { %v718_v11 = vpop.f32.mrf.mxu0 }
  0xdc   : > { %v5344_v12 = vpack.c.bf16 %v1149_v9, %v1148_v8  ;;  %v813_v13 = vmul.f32 %v5264_v21, %v718_v11  ;;  %v4541_v8 = vld [vmem:[%s6556_s4] sm:$0xff]  ;;  %v894_v11 = vadd.s32 3, %v5268_v24 }
  0xdd   : > { %2334 = vmatpush.bf16.msrb.mxu1 %v4541_v8 }
  0xde   : > { %4867 = vst [vmem:[#allocation2 + $0x50] sm:$0xff] %v5344_v12   ;;  %757 = vmatmul.bf16.gmra.mxu0 %v4524_v10  ;;  %v1686_v14 = vshll.u32 %v5344_v12, 16  ;;  %2044 = vmatmul.bf16.vlgmr.msra.gmra.mxu1 %v5344_v12  ;;  %v1684_v15 = vshrl.u32 %v5344_v12, 16  ;;  %v857_v17 = vadd.f32 %v5279_v28, %v813_v13  ;;  %v4527_v13 = vld [vmem:[%s5236_s30 + $0x70] sm:$0xff]  ;;  %vm909_vm1 = vcmp.ge.s32.totalorder %v894_v11, 1 }
  0xdf   : > { %vm919_vm2 = vcmp.lt.s32.totalorder %v894_v11, 17 }
  0xe0   : > { %v1688_v16 = vrot.slane %v1686_v14, 1  ;;  %v1030_v22 = vmax.f32 %v857_v17, 0.0  ;;  %vm5424_vm4 = vmand %vm909_vm1, %vm919_vm2  ;;  %vm1368_vm2 = vsmask.f32 7424 }
  0xe1   : > { %vm952_vm6 = vmand %vm5424_vm4, %vm936_vm3 }
  0xe2   : > { %v5352_v18 = vor.u32 %v1688_v16, %v1684_v15  ;;  %v1150_v29 = vmul.f32 %v4010_v26, %v1030_v22  ;;  %vm998_vm7 = vmand %vm5424_vm4, %vm982_vm5 }
  0xe3   : > { %v720_v19 = vpop.f32.mrf.mxu0 }
  0xe4   : > { %v814_v20 = vmul.f32 %v5264_v21, %v720_v19 }
  0xe6   : > { %v858_v23 = vadd.f32 %v5279_v28, %v814_v20 }
  0xe8   : > { %v1031_v27 = vmax.f32 %v858_v23, 0.0 }
  0xea   : > { %v1151_v30 = vmul.f32 0.0, %v1031_v27  ;;  %v4014_v27 = vsel %vm952_vm6, 1.0, %v6566_v37 }
  0xeb   : > { %v723_v33 = vpop.f32.mrf.mxu0 }
  0xec   : > { %v4648_v34 = vpack.c.bf16 %v1151_v30, %v1150_v29  ;;  %v815_v36 = vmul.f32 %v5264_v21, %v723_v33  ;;  %v4015_v29 = vsel %vm5424_vm4, 1.0, %v6566_v37  ;;  %v4528_v33 = vld [vmem:[%s5236_s30 + $0x78] sm:$0xff] }
  0xee   : > { %4868 = vst [vmem:[#allocation2 + $0x18] sm:$0xff] %v4648_v34   ;;  %762 = vmatmul.bf16.gmra.mxu0 %v4525_v32  ;;  %v859_v40 = vadd.f32 %v5279_v28, %v815_v36 }
  0xf0   : > { %v1032_v44 = vmax.f32 %v859_v40, 0.0 }
  0xf2   : > { %v1152_v52 = vmul.f32 %v4011_v48, %v1032_v44 }
  0xf3   : > { %v725_v41 = vpop.f32.mrf.mxu0 }
  0xf4   : > { %v816_v42 = vmul.f32 %v5264_v21, %v725_v41 }
  0xf6   : > { %v860_v45 = vadd.f32 %v5279_v28, %v816_v42 }
  0xf8   : > { %v1033_v50 = vmax.f32 %v860_v45, 0.0 }
  0xfa   : > { %v1153_v53 = vmul.f32 %v4012_v49, %v1033_v50  ;;  %v4016_v49 = vsel %vm998_vm7, 1.0, %v6566_v37 }
  0xfb   : > { %v728_v55 = vpop.f32.mrf.mxu0 }
  0xfc   : > { %v5392_v56 = vpack.c.bf16 %v1153_v53, %v1152_v52  ;;  %v817_v58 = vmul.f32 %v5264_v21, %v728_v55  ;;  %v895_v53 = vadd.s32 4, %v5268_v24 }
  0xfe   : > { %4869 = vst [vmem:[#allocation2 + $0x30] sm:$0xff] %v5392_v56   ;;  %767 = vmatmul.bf16.gmra.mxu0 %v4526_v54  ;;  %v1698_v59 = vshll.u32 %v5392_v56, 16  ;;  %2049 = vmatmul.bf16.gmra.mxu1 %v5392_v56  ;;  %v1696_v60 = vshrl.u32 %v5392_v56, 16  ;;  %v861_v63 = vadd.f32 %v5279_v28, %v817_v58  ;;  %v4529_v54 = vld [vmem:[%s5236_s30 + $0x80] sm:$0xff]  ;;  %vm910_vm8 = vcmp.ge.s32.totalorder %v895_v53, 1 }
  0xff   : > { %vm920_vm9 = vcmp.lt.s32.totalorder %v895_v53, 17 }
 0x100   : > { %v1700_v61 = vrot.slane %v1698_v59, 1  ;;  %v1034_v4 = vmax.f32 %v861_v63, 0.0  ;;  %v4580_v59 = vld [vmem:[%s6556_s4 + $0x138] sm:$0xff]  ;;  %vm5464_vm10 = vmand %vm910_vm8, %vm920_vm9 }
 0x101   : > { %2085 = vmatpush.bf16.msrb.mxu2 %v4580_v59  ;;  %vm956_vm11 = vmand %vm5464_vm10, %vm936_vm3 }
 0x102   : > { %v5406_v0 = vor.u32 %v1700_v61, %v1696_v60  ;;  %v1154_v9 = vmul.f32 %v4013_v6, %v1034_v4  ;;  %v4017_v4 = vsel %vm956_vm11, 1.0, %v6566_v37  ;;  %vm1002_vm12 = vmand %vm5464_vm10, %vm982_vm5 }
 0x103   : > { %v730_v1 = vpop.f32.mrf.mxu0 }
 0x104   : > { %v818_v2 = vmul.f32 %v5264_v21, %v730_v1 }
 0x105   : > { %2086 = vmatpush.bf16.msrb.mxu2 %v4579_v62 }
 0x106   : > { %v862_v5 = vadd.f32 %v5279_v28, %v818_v2 }
 0x108   : > { %v1035_v7 = vmax.f32 %v862_v5, 0.0  ;;  %v4018_v5 = vsel %vm5464_vm10, 1.0, %v6566_v37 }
 0x109   : > { %2087 = vmatpush.bf16.msrb.mxu2 %v4578_v3 }
 0x10a   : > { %v1155_v10 = vmul.f32 0.0, %v1035_v7 }
 0x10b   : > { %v733_v14 = vpop.f32.mrf.mxu0 }
 0x10c   : > { %v4658_v15 = vpack.c.bf16 %v1155_v10, %v1154_v9  ;;  %v819_v16 = vmul.f32 %v5264_v21, %v733_v14  ;;  %v4530_v9 = vld [vmem:[%s5236_s30 + $0x88] sm:$0xff]  ;;  %v4577_v10 = vld [vmem:[%s6556_s4 + $0x120] sm:$0xff] }
 0x10d   : > { %2088 = vmatpush.bf16.msrb.mxu2 %v4577_v10 }
 0x10e   : > { %4870 = vst [vmem:[#allocation2 + $0x68] sm:$0xff] %v4658_v15   ;;  %772 = vmatmul.bf16.gmra.mxu0 %v4527_v13  ;;  %v863_v19 = vadd.f32 %v5279_v28, %v819_v16  ;;  %v4576_v16 = vld [vmem:[%s6556_s4 + $0x118] sm:$0xff] }
 0x110   : > { %v1036_v23 = vmax.f32 %v863_v19, 0.0 }
 0x111   : > { %2089 = vmatpush.bf16.msrb.mxu2 %v4576_v16  ;;  %v897_v16 = vadd.s32 6, %v5268_v24 }
 0x112   : > { %v1156_v31 = vmul.f32 %v4014_v27, %v1036_v23 }
 0x113   : > { %v735_v20 = vpop.f32.mrf.mxu0  ;;  %vm912_vm4 = vcmp.ge.s32.totalorder %v897_v16, 1  ;;  %vm922_vm6 = vcmp.lt.s32.totalorder %v897_v16, 17 }
 0x114   : > { %v820_v22 = vmul.f32 %v5264_v21, %v735_v20  ;;  %vm5566_vm7 = vmand %vm912_vm4, %vm922_vm6 }
 0x115   : > { %vm964_vm8 = vmand %vm5566_vm7, %vm936_vm3 }
 0x116   : > { %v864_v26 = vadd.f32 %v5279_v28, %v820_v22  ;;  %v4575_v22 = vld [vmem:[%s6556_s4 + $0x110] sm:$0xff]  ;;  %vm1010_vm9 = vmand %vm5566_vm7, %vm982_vm5 }
 0x117   : > { %2090 = vmatpush.bf16.msrb.mxu2 %v4575_v22 }
 0x118   : > { %v1037_v30 = vmax.f32 %v864_v26, 0.0 }
 0x11a   : > { %v1157_v32 = vmul.f32 %v4015_v29, %v1037_v30  ;;  %v4574_v30 = vld [vmem:[%s6556_s4 + $0x108] sm:$0xff] }
 0x11b   : > { %v738_v34 = vpop.f32.mrf.mxu0  ;;  %2091 = vmatpush.bf16.msrb.mxu2 %v4574_v30 }
 0x11c   : > { %v5440_v35 = vpack.c.bf16 %v1157_v32, %v1156_v31  ;;  %v821_v36 = vmul.f32 %v5264_v21, %v738_v34  ;;  %v4019_v31 = vsel %vm1002_vm12, 1.0, %v6566_v37 }
 0x11e   : > { %4871 = vst [vmem:[#allocation2 + $0x78] sm:$0xff] %v5440_v35   ;;  %777 = vmatmul.bf16.gmra.mxu0 %v4528_v33  ;;  %v1710_v38 = vshll.u32 %v5440_v35, 16  ;;  %2054 = vmatmul.bf16.gmra.mxu1 %v5440_v35  ;;  %v1708_v39 = vshrl.u32 %v5440_v35, 16  ;;  %v865_v41 = vadd.f32 %v5279_v28, %v821_v36  ;;  %v896_v36 = vadd.s32 5, %v5268_v24 }
 0x120   : > { %v1712_v40 = vrot.slane %v1710_v38, 1  ;;  %v1038_v45 = vmax.f32 %v865_v41, 0.0  ;;  %v4573_v38 = vld [vmem:[%s6556_s4 + $0x100] sm:$0xff]  ;;  %vm911_vm13 = vcmp.ge.s32.totalorder %v896_v36, 1  ;;  %vm921_vm14 = vcmp.lt.s32.totalorder %v896_v36, 17 }
 0x121   : > { %2092 = vmatpush.bf16.msrb.mxu2 %v4573_v38  ;;  %vm5522_vm15 = vmand %vm911_vm13, %vm921_vm14 }
 0x122   : > { %v5448_v42 = vor.u32 %v1712_v40, %v1708_v39  ;;  %v1158_v51 = vmul.f32 %v4016_v49, %v1038_v45  ;;  %vm960_vm0 = vmand %vm5522_vm15, %vm936_vm3 }
 0x123   : > { %v740_v43 = vpop.f32.mrf.mxu0  ;;  %vm1006_vm1 = vmand %vm5522_vm15, %vm982_vm5 }
 0x124   : > { %v822_v44 = vmul.f32 %v5264_v21, %v740_v43  ;;  %v4024_v43 = vsel %vm5566_vm7, 1.0, %v6566_v37  ;;  %vm1497_vm7 = vcmask 1046528  }
 0x126   : > { %v866_v48 = vadd.f32 %v5279_v28, %v822_v44 }
 0x128   : > { %v1039_v50 = vmax.f32 %v866_v48, 0.0 }
 0x12a   : > { %v1159_v52 = vmul.f32 0.0, %v1039_v50 }
 0x12b   : > { %v743_v55 = vpop.f32.mrf.mxu0 }
 0x12c   : > { %v4668_v57 = vpack.c.bf16 %v1159_v52, %v1158_v51  ;;  %v823_v58 = vmul.f32 %v5264_v21, %v743_v55  ;;  %v4020_v51 = vsel %vm960_vm0, 1.0, %v6566_v37  ;;  %v4021_v52 = vsel %vm5522_vm15, 1.0, %v6566_v37 }
 0x12e   : > { %4872 = vst [vmem:[#allocation2 + $0x80] sm:$0xff] %v4668_v57   ;;  %782 = vmatmul.bf16.gmra.mxu0 %v4529_v54  ;;  %2335 = vmatmul.bf16.vlgmr.msrb.gmra.mxu1 %v5309_v46  ;;  %v867_v61 = vadd.f32 %v5279_v28, %v823_v58  ;;  %v1595_v57 = vld [vmem:[#allocation2 + $0x18] sm:$0x1] }
 0x12f   : > { %v1667_v60 = vunpack.c.l.b16 %v1595_v57 }
 0x130   : > { %v1040_v1 = vmax.f32 %v867_v61, 0.0 }
 0x132   : > { %v1160_v7 = vmul.f32 %v4017_v4, %v1040_v1  ;;  %v5545_v1 = vpack.c.b16 %v1667_v60, %v1667_v60  ;;  %v4592_v60 = vld [vmem:[%s6556_s4 + $0x198] sm:$0xff] }
 0x133   : > { %v745_v63 = vpop.f32.mrf.mxu0 }
 0x134   : > { %v824_v46 = vmul.f32 %v5264_v21, %v745_v63 }
 0x136   : > { %v868_v2 = vadd.f32 %v5279_v28, %v824_v46 }
 0x138   : > { %v1041_v6 = vmax.f32 %v868_v2, 0.0 }
 0x13a   : > { %v1161_v8 = vmul.f32 %v4018_v5, %v1041_v6  ;;  %v1691_v6 = vshll.u32 %v5545_v1, 16 }
 0x13b   : > { %v748_v11 = vpop.f32.mrf.mxu0 }
 0x13c   : > { %v5489_v13 = vpack.c.bf16 %v1161_v8, %v1160_v7  ;;  %v825_v14 = vmul.f32 %v5264_v21, %v748_v11  ;;  %v1693_v11 = vrot.slane %v1691_v6, 1 }
 0x13e   : > { %4873 = vst [vmem:[#allocation2 + $0x8] sm:$0xff] %v5489_v13   ;;  %787 = vmatmul.bf16.gmra.mxu0 %v4530_v9  ;;  %v1722_v15 = vshll.u32 %v5489_v13, 16  ;;  %2059 = vmatmul.bf16.vlgmr.msra.gmra.mxu2 %v5489_v13  ;;  %v1720_v17 = vshrl.u32 %v5489_v13, 16  ;;  %v869_v20 = vadd.f32 %v5279_v28, %v825_v14  ;;  %v4022_v9 = vsel %vm1006_vm1, 1.0, %v6566_v37 }
 0x13f   : > { %2340 = vmatmul.bf16.gmra.mxu1 %v5344_v12  ;;  %v1694_v22 = vsel %vm1368_vm2, %v5352_v18, %v1693_v11  ;;  %v4025_v11 = vsel %vm1010_vm9, 1.0, %v6566_v37 }
 0x140   : > { %v1724_v19 = vrot.slane %v1722_v15, 1  ;;  %v1042_v27 = vmax.f32 %v869_v20, 0.0 }
 0x142   : > { %v5504_v23 = vor.u32 %v1724_v19, %v1720_v17  ;;  %v1162_v33 = vmul.f32 %v4019_v31, %v1042_v27  ;;  %v1596_v17 = vld [vmem:[#allocation2 + $0x68] sm:$0x1]  ;;  %v4596_v27 = vld [vmem:[%s6556_s4 + $0x1b8] sm:$0xff] }
 0x143   : > { %v750_v26 = vpop.f32.mrf.mxu0  ;;  %2932 = vmatpush.bf16.msra.mxu1 %v4596_v27 }
 0x144   : > { %v826_v12 = vmul.f32 %v5264_v21, %v750_v26  ;;  %v1668_v26 = vunpack.c.l.b16 %v1596_v17 }
 0x146   : > { %v870_v29 = vadd.f32 %v5279_v28, %v826_v12  ;;  %v5570_v30 = vpack.c.b16 %v1668_v26, %v1668_v26 }
 0x148   : > { %v1043_v32 = vmax.f32 %v870_v29, 0.0  ;;  %v1703_v36 = vshll.u32 %v5570_v30, 16 }
 0x14a   : > { %v1163_v34 = vmul.f32 0.0, %v1043_v32  ;;  %v4595_v32 = vld [vmem:[%s6556_s4 + $0x1b0] sm:$0xff] }
 0x14b   : > { %v753_v39 = vpop.f32.mrf.mxu0  ;;  %2933 = vmatpush.bf16.msra.mxu1 %v4595_v32  ;;  %v4588_v32 = vld [vmem:[%s6556_s4 + $0x178] sm:$0xff] }
 0x14c   : > { %v4678_v40 = vpack.c.bf16 %v1163_v34, %v1162_v33  ;;  %v827_v41 = vmul.f32 %v5264_v21, %v753_v39  ;;  %2134 = vmatpush.bf16.msrb.mxu3 %v4588_v32  ;;  %v899_v32 = vadd.s32 8, %v5268_v24 }
 0x14e   : > { %4874 = vst [vmem:[#allocation2 + $0x88] sm:$0xff] %v4678_v40   ;;  %v871_v44 = vadd.f32 %v5279_v28, %v827_v41  ;;  %v4594_v40 = vld [vmem:[%s6556_s4 + $0x1a8] sm:$0xff]  ;;  %v4023_v41 = vsel %vm964_vm8, 1.0, %v6566_v37  ;;  %vm914_vm15 = vcmp.ge.s32.totalorder %v899_v32, 1  ;;  %vm924_vm0 = vcmp.lt.s32.totalorder %v899_v32, 17 }
 0x14f   : > { %2345 = vmatmul.bf16.gmra.mxu1 %v5392_v56  ;;  %vm5713_vm1 = vmand %vm914_vm15, %vm924_vm0 }
 0x150   : > { %v1044_v49 = vmax.f32 %v871_v44, 0.0  ;;  %2934 = vmatpush.bf16.msra.mxu1 %v4594_v40  ;;  %vm972_vm4 = vmand %vm5713_vm1, %vm936_vm3 }
 0x151   : > { %vm1018_vm6 = vmand %vm5713_vm1, %vm982_vm5 }
 0x152   : > { %v1164_v54 = vmul.f32 %v4020_v51, %v1044_v49  ;;  %v4593_v51 = vld [vmem:[%s6556_s4 + $0x1a0] sm:$0xff] }
 0x153   : > { %v755_v45 = vpop.f32.mrf.mxu0 }
 0x154   : > { %v828_v48 = vmul.f32 %v5264_v21, %v755_v45  ;;  %v1705_v45 = vrot.slane %v1703_v36, 1  ;;  %2935 = vmatpush.bf16.msra.mxu1 %v4593_v51 }
 0x156   : > { %v872_v50 = vadd.f32 %v5279_v28, %v828_v48 }
 0x158   : > { %v1045_v53 = vmax.f32 %v872_v50, 0.0  ;;  %v1597_v50 = vld [vmem:[#allocation2 + $0x80] sm:$0x1]  ;;  %2936 = vmatpush.bf16.msra.mxu1 %v4592_v60 }
 0x15a   : > { %v1165_v55 = vmul.f32 %v4021_v52, %v1045_v53 }
 0x15b   : > { %v758_v58 = vpop.f32.mrf.mxu0 }
 0x15c   : > { %v5537_v59 = vpack.c.bf16 %v1165_v55, %v1164_v54  ;;  %v829_v61 = vmul.f32 %v5264_v21, %v758_v58  ;;  %v1706_v54 = vsel %vm1368_vm2, %v5406_v0, %v1705_v45  ;;  %v1669_v55 = vunpack.c.l.b16 %v1597_v50 }
 0x15e   : > { %4875 = vst [vmem:[#allocation2 + $0x28] sm:$0xff] %v5537_v59   ;;  %v1734_v62 = vshll.u32 %v5537_v59, 16  ;;  %2064 = vmatmul.bf16.gmra.mxu2 %v5537_v59  ;;  %v1732_v63 = vshrl.u32 %v5537_v59, 16  ;;  %v873_v2 = vadd.f32 %v5279_v28, %v829_v61 }
 0x15f   : > { %2350 = vmatmul.bf16.gmra.mxu1 %v5440_v35 }
 0x160   : > { %v1736_v46 = vrot.slane %v1734_v62, 1  ;;  %v1046_v7 = vmax.f32 %v873_v2, 0.0 }
 0x162   : > { %v5548_v3 = vor.u32 %v1736_v46, %v1732_v63  ;;  %v1166_v14 = vmul.f32 %v4022_v9, %v1046_v7  ;;  %v5606_v63 = vpack.c.b16 %v1669_v55, %v1669_v55 }
 0x163   : > { %v760_v4 = vpop.f32.mrf.mxu0 }
 0x164   : > { %v830_v5 = vmul.f32 %v5264_v21, %v760_v4  ;;  %v4591_v4 = vld [vmem:[%s6556_s4 + $0x190] sm:$0xff]  ;;  %v1715_v7 = vshll.u32 %v5606_v63, 16 }
 0x165   : > { %2937 = vmatpush.bf16.msra.mxu1 %v4591_v4 }
 0x166   : > { %v874_v8 = vadd.f32 %v5279_v28, %v830_v5 }
 0x168   : > { %v1047_v10 = vmax.f32 %v874_v8, 0.0 }
 0x16a   : > { %v1167_v15 = vmul.f32 0.0, %v1047_v10  ;;  %v4590_v10 = vld [vmem:[%s6556_s4 + $0x188] sm:$0xff] }
 0x16b   : > { %v763_v19 = vpop.f32.mrf.mxu0  ;;  %2938 = vmatpush.bf16.msra.mxu1 %v4590_v10 }
 0x16c   : > { %v4688_v20 = vpack.c.bf16 %v1167_v15, %v1166_v14  ;;  %v831_v12 = vmul.f32 %v5264_v21, %v763_v19  ;;  %v1717_v15 = vrot.slane %v1715_v7, 1  ;;  %v898_v19 = vadd.s32 7, %v5268_v24 }
 0x16e   : > { %4876 = vst [vmem:[#allocation2 + $0x40] sm:$0xff] %v4688_v20   ;;  %2093 = vmatmul.bf16.vlgmr.msrb.gmra.mxu2 %v1694_v22  ;;  %v875_v31 = vadd.f32 %v5279_v28, %v831_v12  ;;  %v1598_v20 = vld [vmem:[#allocation2 + $0x88] sm:$0x1]  ;;  %v4589_v22 = vld [vmem:[%s6556_s4 + $0x180] sm:$0xff]  ;;  %v1718_v27 = vsel %vm1368_vm2, %v5448_v42, %v1717_v15  ;;  %vm913_vm10 = vcmp.ge.s32.totalorder %v898_v19, 1  ;;  %vm923_vm11 = vcmp.lt.s32.totalorder %v898_v19, 17 }
 0x16f   : > { %2355 = vmatmul.bf16.gmra.mxu1 %v5489_v13  ;;  %v1670_v29 = vunpack.c.l.b16 %v1598_v20  ;;  %vm5636_vm12 = vmand %vm913_vm10, %vm923_vm11 }
 0x170   : > { %v1048_v38 = vmax.f32 %v875_v31, 0.0  ;;  %2939 = vmatpush.bf16.msra.mxu1 %v4589_v22  ;;  %vm968_vm13 = vmand %vm5636_vm12, %vm936_vm3  ;;  %v4582_v22 = vld [vmem:[%s6556_s4 + $0x148] sm:$0xff] }
 0x171   : > { %vm1014_vm14 = vmand %vm5636_vm12, %vm982_vm5 }
 0x172   : > { %v1168_v48 = vmul.f32 %v4023_v41, %v1048_v38  ;;  %v4587_v38 = vld [vmem:[%s6556_s4 + $0x170] sm:$0xff]  ;;  %v4586_v41 = vld [vmem:[%s6556_s4 + $0x168] sm:$0xff] }
 0x173   : > { %v765_v33 = vpop.f32.mrf.mxu0  ;;  %2135 = vmatpush.bf16.msrb.mxu3 %v4587_v38 }
 0x174   : > { %v832_v34 = vmul.f32 %v5264_v21, %v765_v33 }
 0x175   : > { %v1599_v55 = vld [vmem:[#allocation2 + $0x40] sm:$0x1] }
 0x176   : > { %v876_v39 = vadd.f32 %v5279_v28, %v832_v34  ;;  %v5640_v34 = vpack.c.b16 %v1670_v29, %v1670_v29 }
 0x177   : > { %2136 = vmatpush.bf16.msrb.mxu3 %v4586_v41 }
 0x178   : > { %v1049_v44 = vmax.f32 %v876_v39, 0.0 }
 0x17a   : > { %v1169_v49 = vmul.f32 %v4024_v43, %v1049_v44  ;;  %v1727_v43 = vshll.u32 %v5640_v34, 16 }
 0x17b   : > { %v768_v52 = vpop.f32.mrf.mxu0 }
 0x17c   : > { %v5593_v53 = vpack.c.bf16 %v1169_v49, %v1168_v48  ;;  %v833_v57 = vmul.f32 %v5264_v21, %v768_v52  ;;  %v4026_v48 = vsel %vm968_vm13, 1.0, %v6566_v37  ;;  %v4027_v49 = vsel %vm5636_vm12, 1.0, %v6566_v37 }
 0x17d   : > { %v1729_v51 = vrot.slane %v1727_v43, 1 }
 0x17e   : > { %4877 = vst [vmem:[#allocation2 + $0x58] sm:$0xff] %v5593_v53   ;;  %v1746_v58 = vshll.u32 %v5593_v53, 16  ;;  %2069 = vmatmul.bf16.vlgmr.msra.gmra.mxu3 %v5593_v53  ;;  %2098 = vmatmul.bf16.gmra.mxu2 %v1706_v54  ;;  %v1744_v61 = vshrl.u32 %v5593_v53, 16  ;;  %v877_v46 = vadd.f32 %v5279_v28, %v833_v57  ;;  %v4585_v57 = vld [vmem:[%s6556_s4 + $0x160] sm:$0xff] }
 0x17f   : > { %2360 = vmatmul.bf16.gmra.mxu1 %v5537_v59  ;;  %2137 = vmatpush.bf16.msrb.mxu3 %v4585_v57  ;;  %v4554_v57 = vld [vmem:[%s6556_s4 + $0x68] sm:$0xff] }
 0x180   : > { %v1748_v62 = vrot.slane %v1746_v58, 1  ;;  %v1050_v8 = vmax.f32 %v877_v46, 0.0 }
 0x182   : > { %v5609_v2 = vor.u32 %v1748_v62, %v1744_v61  ;;  %v1170_v16 = vmul.f32 %v4025_v11, %v1050_v8  ;;  %v1730_v61 = vsel %vm1368_vm2, %v5504_v23, %v1729_v51  ;;  %v1671_v62 = vunpack.c.l.b16 %v1599_v55  ;;  %v4583_v11 = vld [vmem:[%s6556_s4 + $0x150] sm:$0xff] }
 0x183   : > { %v770_v5 = vpop.f32.mrf.mxu0 }
 0x184   : > { %v834_v6 = vmul.f32 %v5264_v21, %v770_v5  ;;  %v4584_v5 = vld [vmem:[%s6556_s4 + $0x158] sm:$0xff]  ;;  %v5676_v8 = vpack.c.b16 %v1671_v62, %v1671_v62 }
 0x185   : > { %2138 = vmatpush.bf16.msrb.mxu3 %v4584_v5 }
 0x186   : > { %v878_v9 = vadd.f32 %v5279_v28, %v834_v6 }
 0x188   : > { %v1051_v14 = vmax.f32 %v878_v9, 0.0 }
 0x189   : > { %2139 = vmatpush.bf16.msrb.mxu3 %v4583_v11 }
 0x18a   : > { %v1171_v17 = vmul.f32 0.0, %v1051_v14 }
 0x18b   : > { %v773_v26 = vpop.f32.mrf.mxu0 }
 0x18c   : > { %v4698_v12 = vpack.c.bf16 %v1171_v17, %v1170_v16  ;;  %v835_v31 = vmul.f32 %v5264_v21, %v773_v26  ;;  %v5689_v16 = vpop.f32.mrf.mxu1  ;;  %v1739_v17 = vshll.u32 %v5676_v8, 16  ;;  %v4028_v26 = vsel %vm1014_vm14, 1.0, %v6566_v37 }
 0x18d   : > { %2140 = vmatpush.bf16.msrb.mxu3 %v4582_v22 }
 0x18e   : > { %4878 = vst [vmem:[#allocation2 + $0x10] sm:$0xff] %v4698_v12   ;;  %2103 = vmatmul.bf16.gmra.mxu2 %v1718_v27  ;;  %v879_v36 = vadd.f32 %v5279_v28, %v835_v31  ;;  %v1741_v27 = vrot.slane %v1739_v17, 1 }
 0x18f   : > { %2365 = vmatmul.bf16.gmra.mxu1 %v5593_v53 }
 0x190   : > { %v1052_v44 = vmax.f32 %v879_v36, 0.0  ;;  %v4581_v36 = vld [vmem:[%s6556_s4 + $0x140] sm:$0xff] }
 0x191   : > { %2141 = vmatpush.bf16.msrb.mxu3 %v4581_v36  ;;  %v4923_v36 = vld [vmem:[#allocation2 + $0x50] sm:$0xf0] }
 0x192   : > { %v1172_v52 = vmul.f32 %v4026_v48, %v1052_v44  ;;  %v4556_v44 = vld [vmem:[%s6556_s4 + $0x78] sm:$0xff] }
 0x193   : > { %v775_v39 = vpop.f32.mrf.mxu0  ;;  %2376 = vmatpush.bf16.msra.mxu2 %v4556_v44 }
 0x194   : > { %v836_v40 = vmul.f32 %v5264_v21, %v775_v39  ;;  %v5710_v48 = vpop.f32.mrf.mxu1 }
 0x195   : > { %v1600_v33 = vld [vmem:[#allocation2 + $0x10] sm:$0x1] }
 0x196   : > { %v880_v45 = vadd.f32 %v5279_v28, %v836_v40  ;;  %v1742_v40 = vsel %vm1368_vm2, %v5548_v3, %v1741_v27  ;;  %v1672_v41 = vunpack.c.l.b16 %v1600_v33 }
 0x198   : > { %v1053_v50 = vmax.f32 %v880_v45, 0.0  ;;  %v4564_v45 = vld [vmem:[%s6556_s4 + $0xb8] sm:$0xff] }
 0x199   : > { %2425 = vmatpush.bf16.msra.mxu3 %v4564_v45 }
 0x19a   : > { %v1173_v54 = vmul.f32 %v4027_v49, %v1053_v50  ;;  %v5717_v50 = vpack.c.b16 %v1672_v41, %v1672_v41  ;;  %v4550_v41 = vld [vmem:[%s6556_s4 + $0x48] sm:$0xff] }
 0x19b   : > { %v778_v58 = vpop.f32.mrf.mxu0 }
 0x19c   : > { %v5663_v60 = vpack.c.bf16 %v1173_v54, %v1172_v52  ;;  %v837_v46 = vmul.f32 %v5264_v21, %v778_v58  ;;  %v4555_v54 = vld [vmem:[%s6556_s4 + $0x70] sm:$0xff]  ;;  %v1751_v55 = vshll.u32 %v5717_v50, 16  ;;  %v5733_v62 = vpop.f32.mrf.mxu1 }
 0x19d   : > { %2377 = vmatpush.bf16.msra.mxu2 %v4555_v54 }
 0x19e   : > { %4879 = vst [vmem:[#allocation2 + $0x98] sm:$0xff] %v5663_v60   ;;  %v1758_v4 = vshll.u32 %v5663_v60, 16  ;;  %2074 = vmatmul.bf16.gmra.mxu3 %v5663_v60  ;;  %2108 = vmatmul.bf16.gmra.mxu2 %v1730_v61  ;;  %v1756_v6 = vshrl.u32 %v5663_v60, 16  ;;  %v881_v9 = vadd.f32 %v5279_v28, %v837_v46  ;;  %v4029_v46 = vsel %vm972_vm4, 1.0, %v6566_v37 }
 0x19f   : > { %2370 = vmatmul.bf16.gmra.mxu1 %v5663_v60 }
 0x1a0   : > { %v1760_v7 = vrot.slane %v1758_v4, 1  ;;  %v1054_v19 = vmax.f32 %v881_v9, 0.0  ;;  %v4030_v4 = vsel %vm5713_vm1, 1.0, %v6566_v37 }
 0x1a1   : > { %2378 = vmatpush.bf16.msra.mxu2 %v4554_v57 }
 0x1a2   : > { %v5679_v10 = vor.u32 %v1760_v7, %v1756_v6  ;;  %v1174_v29 = vmul.f32 %v4028_v26, %v1054_v19  ;;  %v1753_v6 = vrot.slane %v1751_v55, 1  ;;  %v4563_v26 = vld [vmem:[%s6556_s4 + $0xb0] sm:$0xff] }
 0x1a3   : > { %v780_v14 = vpop.f32.mrf.mxu0  ;;  %2426 = vmatpush.bf16.msra.mxu3 %v4563_v26 }
 0x1a4   : > { %v838_v15 = vmul.f32 %v5264_v21, %v780_v14  ;;  %v5757_v27 = vpop.f32.mrf.mxu1 }
 0x1a6   : > { %v882_v20 = vadd.f32 %v5279_v28, %v838_v15  ;;  %v4553_v15 = vld [vmem:[%s6556_s4 + $0x60] sm:$0xff] }
 0x1a7   : > { %2379 = vmatpush.bf16.msra.mxu2 %v4553_v15 }
 0x1a8   : > { %v1055_v12 = vmax.f32 %v882_v20, 0.0  ;;  %v1754_v20 = vsel %vm1368_vm2, %v5609_v2, %v1753_v6 }
 0x1aa   : > { %v1175_v31 = vmul.f32 0.0, %v1055_v12 }
 0x1ab   : > { %v783_v38 = vpop.f32.mrf.mxu0 }
 0x1ac   : > { %v4708_v39 = vpack.c.bf16 %v1175_v31, %v1174_v29  ;;  %v839_v43 = vmul.f32 %v5264_v21, %v783_v38  ;;  %v4551_v31 = vld [vmem:[%s6556_s4 + $0x50] sm:$0xff] }
 0x1ad   : > { %v4924_v38 = vld [vmem:[#allocation2 + $0x50] sm:$0xe] }
 0x1ae   : > { %4880 = vst [vmem:[#allocation2 + $0x60] sm:$0xff] %v4708_v39   ;;  %2113 = vmatmul.bf16.gmra.mxu2 %v1742_v40  ;;  %v883_v51 = vadd.f32 %v5279_v28, %v839_v43  ;;  %v4031_v39 = vsel %vm1018_vm6, 1.0, %v6566_v37  ;;  %v5782_v43 = vld [vmem:[%s6555_s3] ss:$0 sm:$0xff]  ;;  %v4925_v45 = vor.u32 %v4924_v38, %v4923_v36 }
 0x1af   : > { %2940 = vmatmul.bf16.vlgmr.msra.gmra.mxu1 %v5392_v56 }
 0x1b0   : > { %v1056_v58 = vmax.f32 %v883_v51, 0.0  ;;  %v1811_v57 = vrot.slane %v4925_v45, 1  ;;  %v5061_v45 = vld [vmem:[#allocation2] sm:$0xff] }
 0x1b2   : > { %v1176_v7 = vmul.f32 %v4029_v46, %v1056_v58  ;;  %v4549_v58 = vld [vmem:[%s6556_s4 + $0x40] sm:$0xff] }
 0x1b3   : > { %v785_v52 = vpop.f32.mrf.mxu0 }
 0x1b4   : > { %v840_v56 = vmul.f32 %v5264_v21, %v785_v52  ;;  %v5785_v52 = vpop.f32.mrf.mxu1 }
 0x1b5   : > { %v1601_v11 = vld [vmem:[#allocation2 + $0x60] sm:$0x1] }
 0x1b6   : > { %v884_v61 = vadd.f32 %v5279_v28, %v840_v56  ;;  %v1673_v22 = vunpack.c.l.b16 %v1601_v11  ;;  %v1812_v56 = vrot.slane %v5545_v1, 1  ;;  %v4562_v1 = vld [vmem:[%s6556_s4 + $0xa8] sm:$0xff]  ;;  %v4927_v11 = vld [vmem:[#allocation2 + $0x30] sm:$0xe] }
 0x1b7   : > { %2427 = vmatpush.bf16.msra.mxu3 %v4562_v1 }
 0x1b8   : > { %v1057_v5 = vmax.f32 %v884_v61, 0.0  ;;  %v5759_v29 = vpack.c.b16 %v1673_v22, %v1673_v22 }
 0x1ba   : > { %v1177_v9 = vmul.f32 %v4030_v4, %v1057_v5  ;;  %v1763_v40 = vshll.u32 %v5759_v29, 16  ;;  %v1813_v4 = vsel %vm1497_vm7, %v1811_v57, %v1812_v56 }
 0x1bb   : > { %v788_v14 = vpop.f32.mrf.mxu0 }
 0x1bc   : > { %v5742_v17 = vpack.c.bf16 %v1177_v9, %v1176_v7  ;;  %v841_v19 = vmul.f32 %v5264_v21, %v788_v14  ;;  %v4552_v21 = vld [vmem:[%s6556_s4 + $0x58] sm:$0xff]  ;;  %v1765_v54 = vrot.slane %v1763_v40, 1  ;;  %v5800_v6 = vpop.f32.mrf.mxu1  ;;  %v4926_v9 = vld [vmem:[#allocation2 + $0x30] sm:$0xf0] }
 0x1bd   : > { %2380 = vmatpush.bf16.msra.mxu2 %v4552_v21 }
 0x1be   : > { %4881 = vst [vmem:[#allocation2 + $0x20] sm:$0xff] %v5742_v17   ;;  %2079 = vmatmul.bf16.gmra.mxu3 %v5742_v17  ;;  %2118 = vmatmul.bf16.gmra.mxu2 %v1754_v20  ;;  %v885_v12 = vadd.f32 %v5279_v28, %v841_v19  ;;  %v5771_v28 = vld [vmem:[%s6554_s2] ss:$0 sm:$0xff]  ;;  %v1766_v46 = vsel %vm1368_vm2, %v5679_v10, %v1765_v54  ;;  %v1770_v7 = vshll.u32 %v5742_v17, 16  ;;  %v1768_v21 = vshrl.u32 %v5742_v17, 16 }
 0x1bf   : > { %2945 = vmatmul.bf16.gmra.mxu1 %v5440_v35  ;;  %v4928_v19 = vor.u32 %v4927_v11, %v4926_v9  ;;  %v4930_v54 = vld [vmem:[#allocation2 + $0x78] sm:$0xe] }
 0x1c0   : > { %v1058_v32 = vmax.f32 %v885_v12, 0.0  ;;  %v1772_v20 = vrot.slane %v1770_v7, 1  ;;  %v1281_v7 = vld [vmem:[#allocation2 + $0x18] sm:$0x1] }
 0x1c1   : > { %2381 = vmatpush.bf16.msra.mxu2 %v4551_v31  ;;  %v5794_v5 = vpop.f32.mrf.mxu2  ;;  %v1280_v31 = vld [vmem:[#allocation2 + $0x38] sm:$0x1] }
 0x1c2   : > { %v1178_v49 = vmul.f32 %v4031_v39, %v1058_v32  ;;  %v5810_v32 = vor.u32 %v1772_v20, %v1768_v21  ;;  %v1352_v40 = vunpack.c.l.b16 %v1280_v31  ;;  %v4932_v21 = vld [vmem:[#allocation2 + $0x8] sm:$0xf0] }
 0x1c3   : > { %v790_v35 = vpop.f32.mrf.mxu0 }
 0x1c4   : > { %v842_v33 = vmul.f32 %v5771_v28, %v790_v35  ;;  %v1814_v35 = vrot.slane %v4928_v19, 1  ;;  %6591 = vst [vmem:[#allocation6_spill] sm:$0xff] %v5810_v32  ;;  %v5812_v36 = vpop.f32.mrf.mxu1  ;;  %v4560_v19 = vld [vmem:[%s6556_s4 + $0x98] sm:$0xff] }
 0x1c5   : > { %2382 = vmatpush.bf16.msra.mxu2 %v4550_v41 }
 0x1c6   : > { %v886_v44 = vadd.f32 %v5782_v43, %v842_v33 }
 0x1c8   : > { %v1059_v51 = vmax.f32 %v886_v44, 0.0  ;;  %v5823_v44 = vpack.c.b16 %v1352_v40, %v1352_v40 }
 0x1c9   : > { %2383 = vmatpush.bf16.msra.mxu2 %v4549_v58  ;;  %v5805_v26 = vpop.f32.mrf.mxu2 }
 0x1ca   : > { %v1179_v55 = vmul.f32 0.0, %v1059_v51  ;;  %v4929_v51 = vld [vmem:[#allocation2 + $0x78] sm:$0xf0]  ;;  %v1377_v56 = vshll.u32 %v5823_v44, 16 }
 0x1cb   : > { %v4931_v57 = vor.u32 %v4930_v54, %v4929_v51  ;;  %v4559_v54 = vld [vmem:[%s6556_s4 + $0x90] sm:$0xff] }
 0x1cc   : > { %v4718_v61 = vpack.c.bf16 %v1179_v55, %v1178_v49  ;;  %v1372_v49 = vshll.u32 %v5061_v45, 16  ;;  %v5826_v55 = vpop.f32.mrf.mxu1 }
 0x1cd   : > { %v1817_v1 = vrot.slane %v4931_v57, 1  ;;  %v4935_v57 = vld [vmem:[#allocation2 + $0x28] sm:$0xf0] }
 0x1ce   : > { %4882 = vst [vmem:[#allocation2 + $0x48] sm:$0xff] %v4718_v61   ;;  %2123 = vmatmul.bf16.gmra.mxu2 %v1766_v46  ;;  %2142 = vmatmul.bf16.vlgmr.msrb.gmra.mxu3 %v1813_v4  ;;  %v1374_v58 = vrot.slane %v1372_v49, 1  ;;  %v1818_v61 = vrot.slane %v5606_v63, 1  ;;  %v1370_v46 = vshrl.u32 %v5061_v45, 16  ;;  %v1379_v4 = vrot.slane %v1377_v56, 1 }
 0x1cf   : > { %2950 = vmatmul.bf16.gmra.mxu1 %v5489_v13  ;;  %v1815_v13 = vrot.slane %v5570_v30, 1  ;;  %v4561_v30 = vld [vmem:[%s6556_s4 + $0xa0] sm:$0xff] }
 0x1d0   : > { %2428 = vmatpush.bf16.msra.mxu3 %v4561_v30  ;;  %v1375_v9 = vor.u32 %v1374_v58, %v1370_v46  ;;  %v1819_v11 = vsel %vm1497_vm7, %v1817_v1, %v1818_v61  ;;  %v1282_v30 = vld [vmem:[#allocation2 + $0x68] sm:$0x1]  ;;  %v4936_v58 = vld [vmem:[#allocation2 + $0x28] sm:$0xe] }
 0x1d1   : > { %v1816_v38 = vsel %vm1497_vm7, %v1814_v35, %v1815_v13  ;;  %v1354_v51 = vunpack.c.l.b16 %v1282_v30  ;;  %v1827_v30 = vrot.slane %v5717_v50, 1  ;;  %v4557_v50 = vld [vmem:[%s6556_s4 + $0x80] sm:$0xff] }
 0x1d3   : > { %v5858_v56 = vpack.c.b16 %v1354_v51, %v1354_v51  ;;  %v5886_v51 = vld [vmem:[%s6559_s7 + $0x38] sm:$0xff] }
 0x1d4   : > { %v5837_v20 = vpop.f32.mrf.mxu1  ;;  %2429 = vmatpush.bf16.msra.mxu3 %v4560_v19  ;;  %3223 = vmatpush.bf16.msrb.mxu0 %v5886_v51 }
 0x1d5   : > { %v1602_v14 = vld [vmem:[#allocation2 + $0x48] sm:$0x1]  ;;  %v1401_v46 = vshll.u32 %v5858_v56, 16 }
 0x1d6   : > { %v1674_v15 = vunpack.c.l.b16 %v1602_v14  ;;  %v1380_v14 = vsel %vm1368_vm2, %v1375_v9, %v1379_v4  ;;  %v1283_v9 = vld [vmem:[#allocation2 + $0x80] sm:$0x1] }
 0x1d7   : > { %v1403_v1 = vrot.slane %v1401_v46, 1 }
 0x1d8   : > { %v5803_v22 = vpack.c.b16 %v1674_v15, %v1674_v15  ;;  %v1353_v15 = vunpack.c.l.b16 %v1281_v7  ;;  %2430 = vmatpush.bf16.msra.mxu3 %v4559_v54 }
 0x1da   : > { %v1775_v12 = vshll.u32 %v5803_v22, 16  ;;  %v5841_v13 = vpack.c.b16 %v1353_v15, %v1353_v15  ;;  %v1355_v15 = vunpack.c.l.b16 %v1283_v9 }
 0x1dc   : > { %v1777_v33 = vrot.slane %v1775_v12, 1  ;;  %v4933_v12 = vld [vmem:[#allocation2 + $0x8] sm:$0xe]  ;;  %v1389_v35 = vshll.u32 %v5841_v13, 16 }
 0x1dd   : > { %v4934_v31 = vor.u32 %v4933_v12, %v4932_v21  ;;  %v4558_v21 = vld [vmem:[%s6556_s4 + $0x88] sm:$0xff]  ;;  %v5877_v12 = vpack.c.b16 %v1355_v15, %v1355_v15 }
 0x1de   : > { %v1778_v39 = vsel %vm1368_vm2, %v5810_v32, %v1777_v33  ;;  %2147 = vmatmul.bf16.gmra.mxu3 %v1816_v38  ;;  %v1391_v38 = vrot.slane %v1389_v35, 1  ;;  %v4938_v35 = vld [vmem:[#allocation2 + $0x58] sm:$0xf0] }
 0x1df   : > { %2128 = vmatmul.bf16.gmra.mxu2 %v1778_v39  ;;  %2955 = vmatmul.bf16.gmra.mxu1 %v5537_v59  ;;  %v5847_v39 = vpop.f32.mrf.mxu1  ;;  %v1820_v40 = vrot.slane %v4934_v31, 1  ;;  %v4939_v31 = vld [vmem:[#allocation2 + $0x58] sm:$0xe] }
 0x1e0   : > { %v1392_v49 = vsel %vm1368_vm2, %v5352_v18, %v1391_v38  ;;  %v4937_v18 = vor.u32 %v4936_v58, %v4935_v57  ;;  %2431 = vmatpush.bf16.msra.mxu3 %v4558_v21  ;;  %v4940_v38 = vor.u32 %v4939_v31, %v4938_v35  ;;  %v1830_v21 = vrot.slane %v5759_v29, 1  ;;  %v4612_v29 = vld [vmem:[%s6556_s4 + $0x238] sm:$0xff] }
 0x1e1   : > { %v5821_v41 = vpop.f32.mrf.mxu2 }
 0x1e2   : > { %v1823_v7 = vrot.slane %v4937_v18, 1 }
 0x1e4   : > { %2432 = vmatpush.bf16.msra.mxu3 %v4557_v50  ;;  %v4531_v50 = vld [vmem:[%s5236_s30 + $0x90] sm:$0xff] }
 0x1e5   : > { %792 = vmatmul.bf16.gmra.mxu0 %v4531_v50 }
 0x1e7   : > { %v5860_v61 = vpop.f32.mrf.mxu1 }
 0x1e8   : > { %3030 = vmatpush.bf16.msrb.mxu3 %v4612_v29 }
 0x1e9   : > { %v5828_v59 = vpop.f32.mrf.mxu2 }
 0x1ee   : > { %2152 = vmatmul.bf16.gmra.mxu3 %v1819_v11 }
 0x1ef   : > { %2384 = vmatmul.bf16.vlgmr.msra.gmra.mxu2 %v1380_v14  ;;  %2960 = vmatmul.bf16.gmra.mxu1 %v5593_v53  ;;  %v1821_v53 = vrot.slane %v5640_v34, 1  ;;  %v1404_v14 = vsel %vm1368_vm2, %v5406_v0, %v1403_v1  ;;  %v5869_v19 = vpop.f32.mrf.mxu1  ;;  %v4941_v1 = vld [vmem:[#allocation2 + $0x98] sm:$0xf0] }
 0x1f1   : > { %v5839_v63 = vpop.f32.mrf.mxu2  ;;  %v1822_v45 = vsel %vm1497_vm7, %v1820_v40, %v1821_v53  ;;  %v1413_v53 = vshll.u32 %v5877_v12, 16 }
 0x1f9   : > { %v5844_v33 = vpop.f32.mrf.mxu2 }
 0x1fe   : > { %2157 = vmatmul.bf16.gmra.mxu3 %v1822_v45  ;;  %v1415_v45 = vrot.slane %v1413_v53, 1  ;;  %v1285_v53 = vld [vmem:[#allocation2 + $0x40] sm:$0x1] }
 0x1ff   : > { %2389 = vmatmul.bf16.gmra.mxu2 %v1392_v49  ;;  %2965 = vmatmul.bf16.gmra.mxu1 %v5663_v60  ;;  %v1824_v60 = vrot.slane %v5676_v8, 1  ;;  %v1284_v49 = vld [vmem:[#allocation2 + $0x88] sm:$0x1] }
 0x200   : > { %v1416_v58 = vsel %vm1368_vm2, %v5448_v42, %v1415_v45  ;;  %v1356_v46 = vunpack.c.l.b16 %v1284_v49 }
 0x201   : > { %v5856_v34 = vpop.f32.mrf.mxu2  ;;  %v1825_v11 = vsel %vm1497_vm7, %v1823_v7, %v1824_v60  ;;  %v2070_v54 = vpop.f32.mrf.mxu3  ;;  %v4942_v7 = vld [vmem:[#allocation2 + $0x98] sm:$0xe] }
 0x202   : > { %v5897_v60 = vpack.c.b16 %v1356_v46, %v1356_v46  ;;  %v4603_v46 = vld [vmem:[%s6556_s4 + $0x1f0] sm:$0xff] }
 0x204   : > { %v1425_v9 = vshll.u32 %v5897_v60, 16 }
 0x206   : > { %v1427_v35 = vrot.slane %v1425_v9, 1  ;;  %v4602_v9 = vld [vmem:[%s6556_s4 + $0x1e8] sm:$0xff] }
 0x208   : > { %v1428_v45 = vsel %vm1368_vm2, %v5504_v23, %v1427_v35 }
 0x209   : > { %v5863_v4 = vpop.f32.mrf.mxu2 }
 0x20e   : > { %2162 = vmatmul.bf16.gmra.mxu3 %v1825_v11  ;;  %v5900_v11 = vpop.f32.mrf.mxu3 }
 0x20f   : > { %2394 = vmatmul.bf16.gmra.mxu2 %v1404_v14  ;;  %2970 = vmatmul.bf16.gmra.mxu1 %v5742_v17  ;;  %v1826_v17 = vrot.slane %v4940_v38, 1  ;;  %v4943_v14 = vor.u32 %v4942_v7, %v4941_v1  ;;  %v4604_v38 = vld [vmem:[%s6556_s4 + $0x1f8] sm:$0xff]  ;;  %v4944_v1 = vld [vmem:[#allocation2 + $0x20] sm:$0xf0]  ;;  %v4945_v7 = vld [vmem:[#allocation2 + $0x20] sm:$0xe] }
 0x210   : > { %2981 = vmatpush.bf16.msrb.mxu2 %v4604_v38 }
 0x211   : > { %v5875_v8 = vpop.f32.mrf.mxu2  ;;  %v1828_v57 = vsel %vm1497_vm7, %v1826_v17, %v1827_v30  ;;  %v1829_v31 = vrot.slane %v4943_v14, 1  ;;  %v1357_v17 = vunpack.c.l.b16 %v1285_v53  ;;  %v1833_v53 = vrot.slane %v5803_v22, 1  ;;  %v4611_v22 = vld [vmem:[%s6556_s4 + $0x230] sm:$0xff] }
 0x212   : > { %3031 = vmatpush.bf16.msrb.mxu3 %v4611_v22 }
 0x213   : > { %v1831_v30 = vsel %vm1497_vm7, %v1829_v31, %v1830_v21  ;;  %v4946_v21 = vor.u32 %v4945_v7, %v4944_v1  ;;  %v4600_v1 = vld [vmem:[%s6556_s4 + $0x1d8] sm:$0xff] }
 0x214   : > { %2982 = vmatpush.bf16.msrb.mxu2 %v4603_v46 }
 0x218   : > { %2983 = vmatpush.bf16.msrb.mxu2 %v4602_v9 }
 0x219   : > { %v5880_v40 = vpop.f32.mrf.mxu2 }
 0x21e   : > { %2167 = vmatmul.bf16.gmra.mxu3 %v1828_v57 }
 0x21f   : > { %2399 = vmatmul.bf16.gmra.mxu2 %v1416_v58  ;;  %v5918_v58 = vpack.c.b16 %v1357_v17, %v1357_v17  ;;  %v4601_v17 = vld [vmem:[%s6556_s4 + $0x1e0] sm:$0xff] }
 0x220   : > { %2984 = vmatpush.bf16.msrb.mxu2 %v4601_v17  ;;  %v4619_v17 = vld [vmem:[%s6559_s7 + $0x30] sm:$0xff] }
 0x221   : > { %v5895_v18 = vpop.f32.mrf.mxu2  ;;  %v5911_v49 = vpop.f32.mrf.mxu3  ;;  %v1437_v14 = vshll.u32 %v5918_v58, 16  ;;  %3224 = vmatpush.bf16.msrb.mxu0 %v4619_v17 }
 0x223   : > { %v1439_v38 = vrot.slane %v1437_v14, 1 }
 0x224   : > { %2985 = vmatpush.bf16.msrb.mxu2 %v4600_v1  ;;  %v1499_v1 = vrot.slane %v5823_v44, 1  ;;  %v4610_v44 = vld [vmem:[%s6556_s4 + $0x228] sm:$0xff] }
 0x225   : > { %v1440_v46 = vsel %vm1368_vm2, %v5548_v3, %v1439_v38  ;;  %v4532_v38 = vld [vmem:[%s5236_s30 + $0x98] sm:$0xff]  ;;  %3032 = vmatpush.bf16.msrb.mxu3 %v4610_v44 }
 0x226   : > { %797 = vmatmul.bf16.gmra.mxu0 %v4532_v38 }
 0x229   : > { %v5902_v15 = vpop.f32.mrf.mxu2  ;;  %v5928_v35 = vpop.f32.mrf.mxu3 }
 0x22e   : > { %2172 = vmatmul.bf16.gmra.mxu3 %v1831_v30  ;;  %v1832_v30 = vrot.slane %v4946_v21, 1 }
 0x22f   : > { %2404 = vmatmul.bf16.gmra.mxu2 %v1428_v45  ;;  %v1286_v45 = vld [vmem:[#allocation2 + $0x10] sm:$0x1] }
 0x230   : > { %v1834_v29 = vsel %vm1497_vm7, %v1832_v30, %v1833_v53  ;;  %v1358_v50 = vunpack.c.l.b16 %v1286_v45  ;;  %v4599_v53 = vld [vmem:[%s6556_s4 + $0x1d0] sm:$0xff]  ;;  %v4892_v30 = vld [vmem:[#allocation2] sm:$0xf0]  ;;  %v4893_v45 = vld [vmem:[#allocation2] sm:$0xe] }
 0x231   : > { %v5916_v57 = vpop.f32.mrf.mxu2  ;;  %2986 = vmatpush.bf16.msrb.mxu2 %v4599_v53  ;;  %v1287_v53 = vld [vmem:[#allocation2 + $0x60] sm:$0x1] }
 0x232   : > { %v5949_v21 = vpack.c.b16 %v1358_v50, %v1358_v50 }
 0x239   : > { %v5930_v31 = vpop.f32.mrf.mxu2 }
 0x23e   : > { %2177 = vmatmul.bf16.gmra.mxu3 %v1834_v29  ;;  %v4598_v29 = vld [vmem:[%s6556_s4 + $0x1c8] sm:$0xff] }
 0x23f   : > { %2409 = vmatmul.bf16.gmra.mxu2 %v1440_v46  ;;  %v4894_v46 = vor.u32 %v4893_v45, %v4892_v30  ;;  %v1359_v45 = vunpack.c.l.b16 %v1287_v53  ;;  %v2097_v53 = vadd.f32 %v5844_v33, %v5710_v48  ;;  %v4609_v48 = vld [vmem:[%s6556_s4 + $0x220] sm:$0xff] }
 0x240   : > { %2987 = vmatpush.bf16.msrb.mxu2 %v4598_v29  ;;  %3033 = vmatpush.bf16.msrb.mxu3 %v4609_v48 }
 0x241   : > { %v5945_v7 = vpop.f32.mrf.mxu3  ;;  %v2119_v9 = vpop.f32.mrf.mxu2  ;;  %v1498_v32 = vrot.slane %v4894_v46, 1  ;;  %v4895_v46 = vld [vmem:[#allocation2 + $0x50] sm:$0xf0] }
 0x242   : > { %v5947_v14 = vadd.f32 %v2119_v9, %v2070_v54  ;;  %v1449_v54 = vshll.u32 %v5949_v21, 16 }
 0x243   : > { %v1500_v38 = vsel %vm1497_vm7, %v1498_v32, %v1499_v1 }
 0x244   : > { %v1451_v37 = vrot.slane %v1449_v54, 1  ;;  %2988 = vmatpush.bf16.msrb.mxu2 %v4597_v47 }
 0x246   : > { %v1452_v30 = vsel %vm1368_vm2, %v5609_v2, %v1451_v37  ;;  %v5981_v37 = vpack.c.b16 %v1359_v45, %v1359_v45 }
 0x248   : > { %5001 = vmatpush.bf16.msra.mxu2 %v5886_v51  ;;  %v4896_v51 = vld [vmem:[#allocation2 + $0x50] sm:$0xe] }
 0x249   : > { %v2082_v50 = vpop.f32.mrf.mxu3  ;;  %v2121_v22 = vpop.f32.mrf.mxu2  ;;  %v4897_v1 = vor.u32 %v4896_v51, %v4895_v46 }
 0x24a   : > { %v5964_v9 = vadd.f32 %v2121_v22, %v5900_v11  ;;  %v2095_v11 = vadd.f32 %v5839_v63, %v5689_v16  ;;  %v1461_v22 = vshll.u32 %v5981_v37, 16  ;;  %v1502_v63 = vrot.slane %v5841_v13, 1 }
 0x24b   : > { %v1501_v45 = vrot.slane %v4897_v1, 1  ;;  %v2100_v13 = vadd.f32 %v5856_v34, %v5733_v62  ;;  %v4898_v1 = vld [vmem:[#allocation2 + $0x30] sm:$0xf0]  ;;  %v1505_v62 = vrot.slane %v5858_v56, 1  ;;  %v4608_v56 = vld [vmem:[%s6556_s4 + $0x218] sm:$0xff] }
 0x24c   : > { %5002 = vmatpush.bf16.msra.mxu2 %v4619_v17  ;;  %v1463_v44 = vrot.slane %v1461_v22, 1  ;;  %3034 = vmatpush.bf16.msrb.mxu3 %v4608_v56 }
 0x24d   : > { %v1503_v17 = vsel %vm1497_vm7, %v1501_v45, %v1502_v63  ;;  %v2102_v63 = vadd.f32 %v5863_v4, %v5757_v27 }
 0x24e   : > { %2433 = vmatmul.bf16.vlgmr.msra.gmra.mxu3 %v1500_v38 }
 0x24f   : > { %2414 = vmatmul.bf16.gmra.mxu2 %v1452_v30 }
 0x251   : > { %v2124_v29 = vpop.f32.mrf.mxu2  ;;  %v2143_v54 = vpop.f32.mrf.mxu3 }
 0x252   : > { %v5979_v47 = vadd.f32 %v2124_v29, %v5911_v49  ;;  %v2144_v32 = vadd.f32 %v2143_v54, %v2095_v11  ;;  %v2491_v11 = vld [vmem:[#allocation2 + $0x68] sm:$0x1]  ;;  %v1464_v29 = vsel %vm1368_vm2, %v5679_v10, %v1463_v44 }
 0x253   : > { %v2563_v54 = vunpack.c.l.b16 %v2491_v11 }
 0x255   : > { %v5998_v51 = vpack.c.b16 %v2563_v54, %v2563_v54  ;;  %v2492_v54 = vld [vmem:[#allocation2 + $0x80] sm:$0x1] }
 0x256   : > { %v2564_v4 = vunpack.c.l.b16 %v2492_v54 }
 0x259   : > { %v2126_v38 = vpop.f32.mrf.mxu2  ;;  %v2145_v16 = vpop.f32.mrf.mxu3 }
 0x25a   : > { %v5988_v30 = vadd.f32 %v2126_v38, %v5928_v35  ;;  %v2146_v49 = vadd.f32 %v2145_v16, %v2097_v53  ;;  %v4899_v53 = vld [vmem:[#allocation2 + $0x30] sm:$0xe]  ;;  %v2587_v38 = vshll.u32 %v5998_v51, 16 }
 0x25b   : > { %v4900_v16 = vor.u32 %v4899_v53, %v4898_v1  ;;  %v6021_v53 = vpack.c.b16 %v2564_v4, %v2564_v4 }
 0x25c   : > { %v2589_v11 = vrot.slane %v2587_v38, 1  ;;  %v4901_v38 = vld [vmem:[#allocation2 + $0x78] sm:$0xf0] }
 0x25e   : > { %2438 = vmatmul.bf16.gmra.mxu3 %v1503_v17  ;;  %v2590_v27 = vsel %vm1368_vm2, %v5406_v0, %v2589_v11 }
 0x25f   : > { %2419 = vmatmul.bf16.gmra.mxu2 %v1464_v29  ;;  %v1504_v29 = vrot.slane %v4900_v16, 1  ;;  %v4902_v16 = vld [vmem:[#allocation2 + $0x78] sm:$0xe] }
 0x261   : > { %v2148_v33 = vpop.f32.mrf.mxu3  ;;  %v1506_v48 = vsel %vm1497_vm7, %v1504_v29, %v1505_v62  ;;  %v2107_v62 = vadd.f32 %v5880_v40, %v5800_v6  ;;  %v4607_v6 = vld [vmem:[%s6556_s4 + $0x210] sm:$0xff] }
 0x262   : > { %v2129_v35 = vpop.f32.mrf.mxu2  ;;  %v2149_v46 = vadd.f32 %v2148_v33, %v2100_v13  ;;  %v2337_v33 = vadd.f32 %v5812_v36, %v2144_v32  ;;  %v1508_v36 = vrot.slane %v5877_v12, 1  ;;  %3035 = vmatpush.bf16.msrb.mxu3 %v4607_v6  ;;  %v4908_v6 = vld [vmem:[#allocation2 + $0x28] sm:$0xe] }
 0x263   : > { %v6001_v22 = vadd.f32 %v2129_v35, %v5945_v7  ;;  %v4618_v7 = vld [vmem:[%s6559_s7 + $0x28] sm:$0xff] }
 0x264   : > { %3225 = vmatpush.bf16.msrb.mxu0 %v4618_v7  ;;  %5003 = vmatpush.bf16.msra.mxu2 %v4618_v7  ;;  %v2493_v7 = vld [vmem:[#allocation2 + $0x88] sm:$0x1]  ;;  %v2342_v40 = vadd.f32 %v5837_v20, %v2149_v46  ;;  %v1511_v20 = vrot.slane %v5897_v60, 1  ;;  %v2115_v60 = vadd.f32 %v5916_v57, %v5821_v41 }
 0x265   : > { %v2565_v4 = vunpack.c.l.b16 %v2493_v7 }
 0x269   : > { %v2150_v44 = vpop.f32.mrf.mxu3 }
 0x26a   : > { %v2131_v34 = vpop.f32.mrf.mxu2  ;;  %v2151_v45 = vadd.f32 %v2150_v44, %v2102_v63  ;;  %v2599_v63 = vshll.u32 %v6021_v53, 16  ;;  %v4903_v44 = vor.u32 %v4902_v16, %v4901_v38  ;;  %v2112_v16 = vadd.f32 %v5902_v15, %v5805_v26 }
 0x26b   : > { %v6007_v17 = vadd.f32 %v2131_v34, %v2082_v50  ;;  %v2105_v50 = vadd.f32 %v5875_v8, %v5785_v52  ;;  %v2339_v8 = vadd.f32 %v5826_v55, %v2146_v49  ;;  %v2110_v55 = vadd.f32 %v5895_v18, %v5794_v5 }
 0x26c   : > { %v2601_v11 = vrot.slane %v2599_v63, 1  ;;  %v1507_v54 = vrot.slane %v4903_v44, 1  ;;  %v2344_v5 = vadd.f32 %v5847_v39, %v2151_v45  ;;  %v4606_v39 = vld [vmem:[%s6556_s4 + $0x208] sm:$0xff] }
 0x26d   : > { %3036 = vmatpush.bf16.msrb.mxu3 %v4606_v39 }
 0x26e   : > { %2443 = vmatmul.bf16.gmra.mxu3 %v1506_v48  ;;  %v1509_v48 = vsel %vm1497_vm7, %v1507_v54, %v1508_v36 }
 0x26f   : > { %2989 = vmatmul.bf16.vlgmr.msrb.gmra.mxu2 %v2590_v27  ;;  %v2602_v27 = vsel %vm1368_vm2, %v5448_v42, %v2601_v11  ;;  %v4904_v42 = vld [vmem:[#allocation2 + $0x8] sm:$0xf0] }
 0x271   : > { %v2153_v13 = vpop.f32.mrf.mxu3 }
 0x272   : > { %v2154_v35 = vadd.f32 %v2153_v13, %v2105_v50  ;;  %v2385_v1 = vpop.f32.mrf.mxu2  ;;  %v6041_v50 = vpack.c.b16 %v2565_v4, %v2565_v4  ;;  %v4907_v4 = vld [vmem:[#allocation2 + $0x28] sm:$0xf0] }
 0x273   : > { %v6023_v0 = vadd.f32 %v2385_v1, %v2337_v33  ;;  %v4905_v33 = vld [vmem:[#allocation2 + $0x8] sm:$0xe]  ;;  %v4909_v57 = vor.u32 %v4908_v6, %v4907_v4 }
 0x274   : > { %v2611_v1 = vshll.u32 %v6041_v50, 16  ;;  %v4906_v38 = vor.u32 %v4905_v33, %v4904_v42  ;;  %v2347_v45 = vadd.f32 %v5860_v61, %v2154_v35  ;;  %v2117_v61 = vadd.f32 %v5930_v31, %v5828_v59 }
 0x276   : > { %v2613_v44 = vrot.slane %v2611_v1, 1 }
 0x278   : > { %v2614_v11 = vsel %vm1368_vm2, %v5504_v23, %v2613_v44  ;;  %v4617_v23 = vld [vmem:[%s6559_s7 + $0x20] sm:$0xff] }
 0x279   : > { %v2155_v52 = vpop.f32.mrf.mxu3  ;;  %3226 = vmatpush.bf16.msrb.mxu0 %v4617_v23  ;;  %5004 = vmatpush.bf16.msra.mxu2 %v4617_v23 }
 0x27a   : > { %v2156_v32 = vadd.f32 %v2155_v52, %v2107_v62  ;;  %v2387_v34 = vpop.f32.mrf.mxu2  ;;  %v1510_v52 = vrot.slane %v4906_v38, 1  ;;  %v1513_v38 = vrot.slane %v4909_v57, 1 }
 0x27b   : > { %v6030_v29 = vadd.f32 %v2387_v34, %v2339_v8  ;;  %v2494_v8 = vld [vmem:[#allocation2 + $0x40] sm:$0x1]  ;;  %v2351_v34 = vpop.f32.mrf.mxu1 }
 0x27c   : > { %v1512_v36 = vsel %vm1497_vm7, %v1510_v52, %v1511_v20  ;;  %v2566_v26 = vunpack.c.l.b16 %v2494_v8  ;;  %v4910_v8 = vld [vmem:[#allocation2 + $0x58] sm:$0xf0] }
 0x27e   : > { %2448 = vmatmul.bf16.gmra.mxu3 %v1509_v48  ;;  %v6061_v48 = vpack.c.b16 %v2566_v26, %v2566_v26 }
 0x27f   : > { %2994 = vmatmul.bf16.gmra.mxu2 %v2602_v27 }
 0x280   : > { %v2623_v41 = vshll.u32 %v6061_v48, 16 }
 0x281   : > { %v2158_v12 = vpop.f32.mrf.mxu3 }
 0x282   : > { %v2159_v49 = vadd.f32 %v2158_v12, %v2110_v55  ;;  %v2390_v56 = vpop.f32.mrf.mxu2  ;;  %v2349_v12 = vadd.f32 %v5869_v19, %v2156_v32  ;;  %v2625_v33 = vrot.slane %v2623_v41, 1  ;;  %v4605_v19 = vld [vmem:[%s6556_s4 + $0x200] sm:$0xff] }
 0x283   : > { %v6043_v13 = vadd.f32 %v2390_v56, %v2342_v40  ;;  %v2353_v55 = vpop.f32.mrf.mxu1  ;;  %v1514_v40 = vrot.slane %v5918_v58, 1  ;;  %3037 = vmatpush.bf16.msrb.mxu3 %v4605_v19 }
 0x284   : > { %v2352_v31 = vadd.f32 %v2351_v34, %v2159_v49 }
 0x289   : > { %v2160_v63 = vpop.f32.mrf.mxu3 }
 0x28a   : > { %v2161_v18 = vadd.f32 %v2160_v63, %v2112_v16  ;;  %v2392_v46 = vpop.f32.mrf.mxu2  ;;  %v2495_v16 = vld [vmem:[#allocation2 + $0x10] sm:$0x1]  ;;  %v1515_v63 = vsel %vm1497_vm7, %v1513_v38, %v1514_v40  ;;  %v4914_v40 = vld [vmem:[#allocation2 + $0x98] sm:$0xe] }
 0x28b   : > { %v6050_v62 = vadd.f32 %v2392_v46, %v2344_v5  ;;  %v2626_v5 = vsel %vm1368_vm2, %v5548_v3, %v2625_v33  ;;  %v2567_v59 = vunpack.c.l.b16 %v2495_v16  ;;  %v2356_v32 = vpop.f32.mrf.mxu1  ;;  %v4911_v3 = vld [vmem:[#allocation2 + $0x58] sm:$0xe] }
 0x28c   : > { %v2354_v39 = vadd.f32 %v2353_v55, %v2161_v18 }
 0x28d   : > { %v6086_v44 = vpack.c.b16 %v2567_v59, %v2567_v59 }
 0x28e   : > { %2453 = vmatmul.bf16.gmra.mxu3 %v1512_v36 }
 0x28f   : > { %2999 = vmatmul.bf16.gmra.mxu2 %v2614_v11  ;;  %v2635_v36 = vshll.u32 %v6086_v44, 16  ;;  %v4912_v11 = vor.u32 %v4911_v3, %v4910_v8 }
 0x291   : > { %v2163_v15 = vpop.f32.mrf.mxu3 }
 0x292   : > { %v2164_v54 = vadd.f32 %v2163_v15, %v2115_v60  ;;  %v2395_v7 = vpop.f32.mrf.mxu2  ;;  %v1517_v60 = vrot.slane %v5949_v21, 1 }
 0x293   : > { %v6063_v27 = vadd.f32 %v2395_v7, %v2347_v45  ;;  %v1516_v45 = vrot.slane %v4912_v11, 1  ;;  %v2496_v7 = vld [vmem:[#allocation2 + $0x60] sm:$0x1]  ;;  %v6097_v23 = vpop.f32.mrf.mxu1  ;;  %v6594_v11 = vmov 0.0  }
 0x294   : > { %v2568_v18 = vunpack.c.l.b16 %v2496_v7  ;;  %v2357_v41 = vadd.f32 %v2356_v32, %v2164_v54  ;;  %v1520_v54 = vrot.slane %v5981_v37, 1  ;;  %v4616_v32 = vld [vmem:[%s6559_s7 + $0x18] sm:$0xff] }
 0x295   : > { %v1518_v4 = vsel %vm1497_vm7, %v1516_v45, %v1517_v60  ;;  %3227 = vmatpush.bf16.msrb.mxu0 %v4616_v32  ;;  %5005 = vmatpush.bf16.msra.mxu2 %v4616_v32 }
 0x296   : > { %v6105_v55 = vpack.c.b16 %v2568_v18, %v2568_v18 }
 0x299   : > { %v2165_v35 = vpop.f32.mrf.mxu3 }
 0x29a   : > { %v6073_v56 = vadd.f32 %v2165_v35, %v2117_v61  ;;  %v2397_v42 = vpop.f32.mrf.mxu2  ;;  %v793_v35 = vpop.f32.mrf.mxu0 }
 0x29b   : > { %v6075_v1 = vadd.f32 %v2397_v42, %v2349_v12  ;;  %v4913_v12 = vld [vmem:[#allocation2 + $0x98] sm:$0xf0]  ;;  %v900_v42 = vadd.s32 9, %v5268_v24  ;;  %v2361_v33 = vpop.f32.mrf.mxu1  ;;  %v843_v38 = vmul.f32 %v5771_v28, %v793_v35 }
 0x29c   : > { %v4915_v16 = vor.u32 %v4914_v40, %v4913_v12 }
 0x29d   : > { %vm915_vm8 = vcmp.ge.s32.totalorder %v900_v42, 1  ;;  %vm925_vm9 = vcmp.lt.s32.totalorder %v900_v42, 17  ;;  %v887_v19 = vadd.f32 %v5782_v43, %v843_v38  ;;  %v2708_v38 = vrot.slane %v5998_v51, 1 }
 0x29e   : > { %2458 = vmatmul.bf16.gmra.mxu3 %v1515_v63  ;;  %v1519_v24 = vrot.slane %v4915_v16, 1  ;;  %vm6119_vm10 = vmand %vm915_vm8, %vm925_vm9 }
 0x29f   : > { %3004 = vmatmul.bf16.gmra.mxu2 %v2626_v5  ;;  %vm976_vm11 = vmand %vm6119_vm10, %vm936_vm3  ;;  %v1060_v3 = vmax.f32 %v887_v19, 0.0 }
 0x2a0   : > { %v1521_v37 = vsel %vm1497_vm7, %v1519_v24, %v1520_v54  ;;  %vm1022_vm3 = vmand %vm6119_vm10, %vm982_vm5  ;;  %vm3340_vm5 = vsmask.f32 3328 }
 0x2a1   : > { %v2168_v58 = vpop.f32.mrf.mxu3 }
 0x2a2   : > { %v6084_v20 = vadd.f32 %v2168_v58, %v5947_v14  ;;  %v2400_v46 = vpop.f32.mrf.mxu2  ;;  %v2637_v14 = vrot.slane %v2635_v36, 1  ;;  %v2497_v58 = vld [vmem:[#allocation2 + $0x48] sm:$0x1] }
 0x2a3   : > { %v6088_v52 = vadd.f32 %v2400_v46, %v2352_v31  ;;  %v795_v46 = vpop.f32.mrf.mxu0  ;;  %v2569_v8 = vunpack.c.l.b16 %v2497_v58 }
 0x2a4   : > { %v2638_v6 = vsel %vm1368_vm2, %v5609_v2, %v2637_v14  ;;  %v2647_v2 = vshll.u32 %v6105_v55, 16  ;;  %v844_v36 = vmul.f32 %v5771_v28, %v795_v46  ;;  %v4033_v14 = vsel %vm6119_vm10, 1.0, %v6594_v11 }
 0x2a5   : > { %v6143_v7 = vpack.c.b16 %v2569_v8, %v2569_v8 }
 0x2a6   : > { %v2649_v59 = vrot.slane %v2647_v2, 1  ;;  %v888_v25 = vadd.f32 %v5782_v43, %v844_v36 }
 0x2a7   : > { %v2659_v12 = vshll.u32 %v6143_v7, 16 }
 0x2a9   : > { %v2170_v26 = vpop.f32.mrf.mxu3 }
 0x2aa   : > { %v6093_v49 = vadd.f32 %v2170_v26, %v5964_v9  ;;  %v2402_v34 = vpop.f32.mrf.mxu2  ;;  %v4032_v26 = vsel %vm976_vm11, 1.0, %v6594_v11 }
 0x2ab   : > { %v6095_v15 = vadd.f32 %v2402_v34, %v2354_v39  ;;  %v2363_v39 = vpop.f32.mrf.mxu1  ;;  %v2362_v34 = vadd.f32 %v2361_v33, %v6084_v20 }
 0x2ac   : > { %v2364_v2 = vadd.f32 %v2363_v39, %v6093_v49  ;;  %v4629_v49 = vld [vmem:[%s6562_s10 + $0x38] sm:$0xff] }
 0x2ad   : > { %3631 = vmatpush.bf16.msrb.mxu1 %v4629_v49  ;;  %v4615_v49 = vld [vmem:[%s6559_s7 + $0x10] sm:$0xff] }
 0x2ae   : > { %2463 = vmatmul.bf16.gmra.mxu3 %v1518_v4  ;;  %v1180_v4 = vmul.f32 %v4032_v26, %v1060_v3  ;;  %3228 = vmatpush.bf16.msrb.mxu0 %v4615_v49 }
 0x2af   : > { %3009 = vmatmul.bf16.gmra.mxu2 %v2638_v6  ;;  %v1061_v6 = vmax.f32 %v888_v25, 0.0 }
 0x2b0   : > { %5006 = vmatpush.bf16.msra.mxu2 %v4615_v49 }
 0x2b1   : > { %v2173_v21 = vpop.f32.mrf.mxu3  ;;  %v1181_v35 = vmul.f32 %v4033_v14, %v1061_v6  ;;  %v4957_v14 = vld [vmem:[#allocation2 + $0x78] sm:$0xf0] }
 0x2b2   : > { %v6103_v9 = vadd.f32 %v2173_v21, %v5979_v47  ;;  %v2405_v57 = vpop.f32.mrf.mxu2  ;;  %v798_v21 = vpop.f32.mrf.mxu0 }
 0x2b3   : > { %v6107_v61 = vadd.f32 %v2405_v57, %v2357_v41  ;;  %v4954_v41 = vld [vmem:[#allocation2 + $0x30] sm:$0xf0]  ;;  %v4955_v57 = vld [vmem:[#allocation2 + $0x30] sm:$0xe]  ;;  %v845_v20 = vmul.f32 %v5771_v28, %v798_v21  ;;  %v6149_v40 = vpack.c.bf16 %v1181_v35, %v1180_v4  ;;  %v2366_v16 = vpop.f32.mrf.mxu1 }
 0x2b4   : > { %v4956_v42 = vor.u32 %v4955_v57, %v4954_v41  ;;  %v2367_v26 = vadd.f32 %v2366_v16, %v6103_v9  ;;  %v2711_v41 = vrot.slane %v6021_v53, 1 }
 0x2b5   : > { %4883 = vst [vmem:[#allocation2 + $0x70] sm:$0xff] %v6149_v40   ;;  %2975 = vmatmul.bf16.gmra.mxu1 %v6149_v40  ;;  %v2666_v53 = vshll.u32 %v6149_v40, 16 }
 0x2b6   : > { %v2707_v58 = vrot.slane %v4956_v42, 1 }
 0x2b9   : > { %v2175_v47 = vpop.f32.mrf.mxu3 }
 0x2ba   : > { %v6114_v63 = vadd.f32 %v2175_v47, %v5988_v30  ;;  %v6116_v5 = vpop.f32.mrf.mxu2  ;;  %v2650_v30 = vsel %vm1368_vm2, %v5679_v10, %v2649_v59  ;;  %v2661_v59 = vrot.slane %v2659_v12, 1  ;;  %v800_v32 = vpop.f32.mrf.mxu0 }
 0x2bb   : > { %v846_v46 = vmul.f32 %v5771_v28, %v800_v32  ;;  %v4960_v32 = vld [vmem:[#allocation2 + $0x8] sm:$0xf0] }
 0x2bd   : > { %v890_v8 = vadd.f32 %v5782_v43, %v846_v46 }
 0x2be   : > { %2468 = vmatmul.bf16.gmra.mxu3 %v1521_v37  ;;  %v4034_v37 = vsel %vm1022_vm3, 1.0, %v6594_v11  ;;  %v2368_v11 = vpop.f32.mrf.mxu1 }
 0x2bf   : > { %3014 = vmatmul.bf16.gmra.mxu2 %v2650_v30  ;;  %v6596_v30 = vld [vmem:[#allocation6_spill] sm:$0xff]  ;;  %v1063_v36 = vmax.f32 %v890_v8, 0.0 }
 0x2c0   : > { %v2662_v31 = vsel %vm1368_vm2, %v6596_v30, %v2661_v59  ;;  %v2668_v59 = vrot.slane %v2666_v53, 1 }
 0x2c1   : > { %v2178_v60 = vpop.f32.mrf.mxu3 }
 0x2c2   : > { %v6141_v45 = vadd.f32 %v2178_v60, %v6001_v22  ;;  %v2410_v10 = vpop.f32.mrf.mxu2  ;;  %v889_v22 = vadd.f32 %v5782_v43, %v845_v20  ;;  %v1183_v60 = vmul.f32 0.0, %v1063_v36  ;;  %v2369_v43 = vadd.f32 %v2368_v11, %v6114_v63  ;;  %v4628_v20 = vld [vmem:[%s6562_s10 + $0x30] sm:$0xff]  ;;  %v4964_v11 = vld [vmem:[#allocation2 + $0x28] sm:$0xe] }
 0x2c3   : > { %v6145_v18 = vadd.f32 %v2410_v10, %v2362_v34  ;;  %v4958_v10 = vld [vmem:[#allocation2 + $0x78] sm:$0xe]  ;;  %3632 = vmatpush.bf16.msrb.mxu1 %v4628_v20 }
 0x2c4   : > { %v1062_v51 = vmax.f32 %v889_v22, 0.0  ;;  %v4959_v6 = vor.u32 %v4958_v10, %v4957_v14  ;;  %v2717_v10 = vrot.slane %v6061_v48, 1 }
 0x2c6   : > { %v1182_v3 = vmul.f32 %v4034_v37, %v1062_v51  ;;  %v2710_v35 = vrot.slane %v4959_v6, 1  ;;  %v2371_v22 = vpop.f32.mrf.mxu1  ;;  %v4961_v51 = vld [vmem:[#allocation2 + $0x8] sm:$0xe] }
 0x2c8   : > { %v4728_v4 = vpack.c.bf16 %v1183_v60, %v1182_v3  ;;  %v2712_v12 = vsel %vm1497_vm7, %v2710_v35, %v2711_v41  ;;  %v4967_v35 = vld [vmem:[#allocation2 + $0x58] sm:$0xe] }
 0x2c9   : > { %v2180_v33 = vpop.f32.mrf.mxu3 }
 0x2ca   : > { %v6157_v47 = vadd.f32 %v2180_v33, %v6007_v17  ;;  %v2412_v54 = vpop.f32.mrf.mxu2  ;;  %v2709_v17 = vsel %vm1497_vm7, %v2707_v58, %v2708_v38  ;;  %4884 = vst [vmem:[#allocation2 + $0x90] sm:$0xff] %v4728_v4  }
 0x2cb   : > { %v6163_v24 = vadd.f32 %v2412_v54, %v2364_v2  ;;  %v2664_v54 = vshrl.u32 %v6149_v40, 16 }
 0x2cd   : > { %v2669_v46 = vor.u32 %v2668_v59, %v2664_v54 }
 0x2ce   : > { %3038 = vmatmul.bf16.vlgmr.msrb.gmra.mxu3 %v2709_v17  ;;  %v4962_v17 = vor.u32 %v4961_v51, %v4960_v32  ;;  %v2373_v40 = vpop.f32.mrf.mxu1  ;;  %v4624_v51 = vld [vmem:[%s6562_s10 + $0x10] sm:$0xff] }
 0x2cf   : > { %3019 = vmatmul.bf16.gmra.mxu2 %v2662_v31  ;;  %v2374_v37 = vadd.f32 %v2373_v40, %v6157_v47  ;;  %v2714_v31 = vrot.slane %v6041_v50, 1  ;;  %v4963_v50 = vld [vmem:[#allocation2 + $0x28] sm:$0xf0] }
 0x2d0   : > { %v4965_v14 = vor.u32 %v4964_v11, %v4963_v50  ;;  %v4453_v11 = vld [vmem:[%s5236_s30 + $0x10] sm:$0xf] }
 0x2d1   : > { %v2434_v39 = vpop.f32.mrf.mxu3  ;;  %v2498_v42 = vld [vmem:[#allocation2 + $0x90] sm:$0x1] }
 0x2d2   : > { %v2415_v25 = vpop.f32.mrf.mxu2  ;;  %v6176_v28 = vadd.f32 %v2434_v39, %v6023_v0  ;;  %v2570_v63 = vunpack.c.l.b16 %v2498_v42  ;;  %v4627_v39 = vld [vmem:[%s6562_s10 + $0x28] sm:$0xff]  ;;  %v2716_v6 = vrot.slane %v4965_v14, 1  ;;  %v4454_v14 = vld [vmem:[%s5236_s30 + $0x14] sm:$0xf] }
 0x2d3   : > { %v6178_v34 = vadd.f32 %v2415_v25, %v2367_v26  ;;  %v2713_v26 = vrot.slane %v4962_v17, 1  ;;  %3633 = vmatpush.bf16.msrb.mxu1 %v4627_v39  ;;  %v2726_v17 = vrot.slane %v6143_v7, 1  ;;  %v4976_v39 = vld [vmem:[#allocation2 + $0x70] sm:$0xe] }
 0x2d4   : > { %v6191_v33 = vpack.c.b16 %v2570_v63, %v2570_v63  ;;  %v4625_v63 = vld [vmem:[%s6562_s10 + $0x18] sm:$0xff] }
 0x2d5   : > { %v2715_v25 = vsel %vm1497_vm7, %v2713_v26, %v2714_v31  ;;  %v4975_v26 = vld [vmem:[#allocation2 + $0x70] sm:$0xf0] }
 0x2d6   : > { %v2671_v19 = vshll.u32 %v6191_v33, 16  ;;  %v2729_v50 = vrot.slane %v6191_v33, 1  ;;  %v4455_v33 = vld [vmem:[%s5236_s30 + $0x18] sm:$0x1] }
 0x2d9   : > { %v2436_v21 = vpop.f32.mrf.mxu3 }
 0x2da   : > { %v2417_v9 = vpop.f32.mrf.mxu2  ;;  %v6183_v57 = vadd.f32 %v2436_v21, %v6030_v29  ;;  %v2372_v29 = vadd.f32 %v2371_v22, %v6141_v45  ;;  %v2673_v45 = vrot.slane %v2671_v19, 1  ;;  %v2718_v21 = vsel %vm1497_vm7, %v2716_v6, %v2717_v10  ;;  %v4614_v22 = vld [vmem:[%s6559_s7 + $0x8] sm:$0xff] }
 0x2db   : > { %v6185_v0 = vadd.f32 %v2417_v9, %v2369_v43  ;;  %v4626_v43 = vld [vmem:[%s6562_s10 + $0x20] sm:$0xff]  ;;  %v4966_v9 = vld [vmem:[#allocation2 + $0x58] sm:$0xf0]  ;;  %3229 = vmatpush.bf16.msrb.mxu0 %v4614_v22  ;;  %5007 = vmatpush.bf16.msra.mxu2 %v4614_v22  ;;  %v2723_v19 = vrot.slane %v6105_v55, 1  ;;  %v3344_v10 = vshrl.u32 %v4453_v11, 16  ;;  %v3347_v6 = vshll.u32 %v4453_v11, 16 }
 0x2dc   : > { %3634 = vmatpush.bf16.msrb.mxu1 %v4626_v43  ;;  %v4968_v20 = vor.u32 %v4967_v35, %v4966_v9  ;;  %v3353_v43 = vshll.u32 %v4454_v14, 16 }
 0x2dd   : > { %v3346_v35 = vrot.slane %v3344_v10, 4 }
 0x2de   : > { %3043 = vmatmul.bf16.gmra.mxu3 %v2712_v12  ;;  %v2719_v42 = vrot.slane %v4968_v20, 1  ;;  %v3349_v20 = vrot.slane %v3347_v6, 5 }
 0x2e0   : > { %3635 = vmatpush.bf16.msrb.mxu1 %v4625_v63  ;;  %v3350_v63 = vor.u32 %v3349_v20, %v3346_v35 }
 0x2e1   : > { %v2439_v2 = vpop.f32.mrf.mxu3 }
 0x2e2   : > { %v2420_v38 = vpop.f32.mrf.mxu2  ;;  %v6196_v16 = vadd.f32 %v2439_v2, %v6043_v13  ;;  %v2674_v13 = vsel %vm1368_vm2, %v2669_v46, %v2673_v45  ;;  %v2359_v2 = vadd.f32 %v6097_v23, %v6073_v56  ;;  %v4972_v23 = vld [vmem:[#allocation2 + $0x20] sm:$0xf0]  ;;  %vm3341_vm2 = vsmask.f32 7440 }
 0x2e3   : > { %v6200_v58 = vadd.f32 %v2420_v38, %v2372_v29  ;;  %3024 = vmatmul.bf16.gmra.mxu2 %v2674_v13  ;;  %v4970_v29 = vld [vmem:[#allocation2 + $0x98] sm:$0xe]  ;;  %v6258_v13 = vpop.f32.mrf.mxu1  ;;  %vm6290_vm12 = vmor %vm3340_vm5, %vm3341_vm2 }
 0x2e4   : > { %v2408_v54 = vadd.f32 %v6116_v5, %v2359_v2  ;;  %3636 = vmatpush.bf16.msrb.mxu1 %v4624_v51  ;;  %v4973_v5 = vld [vmem:[#allocation2 + $0x20] sm:$0xe] }
 0x2e5   : > { %v4974_v45 = vor.u32 %v4973_v5, %v4972_v23 }
 0x2e9   : > { %v2441_v30 = vpop.f32.mrf.mxu3 }
 0x2ea   : > { %v2422_v8 = vpop.f32.mrf.mxu2  ;;  %v6209_v3 = vadd.f32 %v2441_v30, %v6050_v62  ;;  %v4623_v30 = vld [vmem:[%s6562_s10 + $0x8] sm:$0xff] }
 0x2eb   : > { %v6211_v36 = vadd.f32 %v2422_v8, %v2374_v37  ;;  %v2725_v37 = vrot.slane %v4974_v45, 1  ;;  %3637 = vmatpush.bf16.msrb.mxu1 %v4623_v30  ;;  %v4456_v45 = vld [vmem:[%s5236_s30 + $0x20] sm:$0xf] }
 0x2ec   : > { %v3371_v30 = vshll.u32 %v4456_v45, 16 }
 0x2ee   : > { %3048 = vmatmul.bf16.gmra.mxu3 %v2715_v25  ;;  %v4977_v25 = vor.u32 %v4976_v39, %v4975_v26  ;;  %v3373_v39 = vrot.slane %v3371_v30, 5 }
 0x2f1   : > { %v2444_v60 = vpop.f32.mrf.mxu3 }
 0x2f2   : > { %v6218_v47 = vadd.f32 %v2444_v60, %v6063_v27  ;;  %v6268_v31 = vpop.f32.mrf.mxu2  ;;  %v2728_v60 = vrot.slane %v4977_v25, 1 }
 0x2f4   : > { %v2730_v22 = vsel %vm1497_vm7, %v2728_v60, %v2729_v50  ;;  %v4458_v60 = vld [vmem:[%s5236_s30 + $0x28] sm:$0x1] }
 0x2f9   : > { %v2446_v62 = vpop.f32.mrf.mxu3 }
 0x2fa   : > { %v6222_v4 = vadd.f32 %v2446_v62, %v6075_v1  ;;  %v2720_v1 = vrot.slane %v6086_v44, 1  ;;  %v6284_v9 = vpop.f32.mrf.mxu2 }
 0x2fe   : > { %3053 = vmatmul.bf16.gmra.mxu3 %v2718_v21  ;;  %v3357_v21 = vshrl.u32 %v4454_v14, 16  ;;  %v3387_v14 = vshll.u32 %v4458_v60, 16 }
 0x301   : > { %v2449_v27 = vpop.f32.mrf.mxu3 }
 0x302   : > { %v6229_v41 = vadd.f32 %v2449_v27, %v6088_v52  ;;  %v2721_v52 = vsel %vm1497_vm7, %v2719_v42, %v2720_v1  ;;  %v3359_v1 = vrot.slane %v3357_v21, 4  ;;  %v2991_v21 = vadd.f32 %v6268_v31, %v6258_v13  ;;  %v6324_v13 = vld [vmem:[%s6557_s5] ss:$0 sm:$0xff] }
 0x309   : > { %v2451_v48 = vpop.f32.mrf.mxu3 }
 0x30a   : > { %v6233_v12 = vadd.f32 %v2451_v48, %v6095_v15  ;;  %v4969_v15 = vld [vmem:[#allocation2 + $0x98] sm:$0xf0]  ;;  %v3355_v48 = vrot.slane %v3353_v43, 5  ;;  %v3389_v43 = vrot.slane %v3387_v14, 5 }
 0x30b   : > { %v4971_v38 = vor.u32 %v4970_v29, %v4969_v15 }
 0x30d   : > { %v2722_v32 = vrot.slane %v4971_v38, 1 }
 0x30e   : > { %3058 = vmatmul.bf16.gmra.mxu3 %v2721_v52  ;;  %v3360_v52 = vor.u32 %v3359_v1, %v3355_v48 }
 0x310   : > { %v3361_v2 = vrot.slane %v3360_v52, 4 }
 0x311   : > { %v2454_v53 = vpop.f32.mrf.mxu3 }
 0x312   : > { %v6243_v44 = vadd.f32 %v2454_v53, %v6107_v61  ;;  %v2724_v61 = vsel %vm1497_vm7, %v2722_v32, %v2723_v19  ;;  %v3351_v53 = vrot.slane %v3350_v63, 4 }
 0x319   : > { %v2456_v59 = vpop.f32.mrf.mxu3 }
 0x31a   : > { %v6249_v49 = vadd.f32 %v2456_v59, %v2408_v54  ;;  %v4622_v54 = vld [vmem:[%s6562_s10] sm:$0xff]  ;;  %v3356_v59 = vsel %vm6290_vm12, %v3351_v53, %v3355_v48  ;;  %v4459_v53 = vld [vmem:[%s5236_s30 + $0x30] sm:$0xf] }
 0x31b   : > { %v3551_v51 = vunpack.c.l.b16 %v3356_v59  ;;  %3638 = vmatpush.bf16.msrb.mxu1 %v4622_v54  ;;  %v3392_v54 = vshrl.u32 %v4459_v53, 16  ;;  %v3395_v59 = vshll.u32 %v4459_v53, 16 }
 0x31e   : > { %3063 = vmatmul.bf16.gmra.mxu3 %v2724_v61 }
 0x321   : > { %v2459_v46 = vpop.f32.mrf.mxu3 }
 0x322   : > { %v6256_v56 = vadd.f32 %v2459_v46, %v6145_v18  ;;  %v2727_v18 = vsel %vm1497_vm7, %v2725_v37, %v2726_v17  ;;  %v2995_v46 = vpop.f32.mrf.mxu2  ;;  %v3368_v37 = vshrl.u32 %v4456_v45, 16 }
 0x324   : > { %v3370_v26 = vrot.slane %v3368_v37, 4 }
 0x326   : > { %v3374_v11 = vor.u32 %v3373_v39, %v3370_v26 }
 0x328   : > { %v3375_v6 = vrot.slane %v3374_v11, 4 }
 0x329   : > { %v2461_v55 = vpop.f32.mrf.mxu3 }
 0x32a   : > { %v6262_v40 = vadd.f32 %v2461_v55, %v6163_v24  ;;  %v6273_v24 = vpop.f32.mrf.mxu1  ;;  %v4457_v55 = vld [vmem:[%s5236_s30 + $0x24] sm:$0xf]  ;;  %v2997_v10 = vpop.f32.mrf.mxu2 }
 0x32e   : > { %3068 = vmatmul.bf16.gmra.mxu3 %v2727_v18  ;;  %v3377_v18 = vshll.u32 %v4457_v55, 16 }
 0x330   : > { %v3379_v25 = vrot.slane %v3377_v18, 5 }
 0x331   : > { %v2464_v8 = vpop.f32.mrf.mxu3 }
 0x332   : > { %v6271_v7 = vadd.f32 %v2464_v8, %v6178_v34  ;;  %v4613_v34 = vld [vmem:[%s6559_s7] sm:$0xff]  ;;  %v6287_v42 = vpop.f32.mrf.mxu1  ;;  %v3380_v20 = vsel %vm6290_vm12, %v3375_v6, %v3379_v25 }
 0x333   : > { %3230 = vmatpush.bf16.msrb.mxu0 %v4613_v34  ;;  %5008 = vmatpush.bf16.msra.mxu2 %v4613_v34  ;;  %v3553_v1 = vunpack.c.l.b16 %v3380_v20 }
 0x339   : > { %v2466_v62 = vpop.f32.mrf.mxu3 }
 0x33a   : > { %v6279_v27 = vadd.f32 %v2466_v62, %v6185_v0  ;;  %v3363_v0 = vshll.u32 %v4455_v33, 16  ;;  %v6304_v5 = vpop.f32.mrf.mxu1 }
 0x33c   : > { %v3365_v15 = vrot.slane %v3363_v0, 5  ;;  %v2993_v0 = vadd.f32 %v6284_v9, %v6273_v24  ;;  %v3394_v24 = vrot.slane %v3392_v54, 4  ;;  %v3397_v9 = vrot.slane %v3395_v59, 5 }
 0x33e   : > { %3073 = vmatmul.bf16.gmra.mxu3 %v2730_v22  ;;  %v3366_v32 = vsel %vm6290_vm12, %v3361_v2, %v3365_v15  ;;  %v4460_v15 = vld [vmem:[%s5236_s30 + $0x34] sm:$0xf]  ;;  %v6331_v2 = vpop.f32.mrf.mxu2  ;;  %v3398_v18 = vor.u32 %v3397_v9, %v3394_v24  ;;  %v4464_v9 = vld [vmem:[%s5236_s30 + $0x48] sm:$0x1] }
 0x33f   : > { %v3552_v61 = vunpack.c.l.b16 %v3366_v32  ;;  %v3401_v32 = vshll.u32 %v4460_v15, 16 }
 0x341   : > { %v2469_v38 = vpop.f32.mrf.mxu3  ;;  %v3567_v23 = vpack.c.b16 %v3552_v61, %v3551_v51  ;;  %v3405_v51 = vshrl.u32 %v4460_v15, 16  ;;  %v3403_v45 = vrot.slane %v3401_v32, 5 }
 0x342   : > { %v6300_v19 = vadd.f32 %v2469_v38, %v6200_v58  ;;  %v3381_v58 = vshrl.u32 %v4457_v55, 16  ;;  %v6314_v35 = vpop.f32.mrf.mxu1 }
 0x343   : > { %3639 = vmatmul.bf16.vlgmr.msrb.gmra.mxu1 %v3567_v23  ;;  %v3407_v37 = vrot.slane %v3405_v51, 4 }
 0x344   : > { %v3383_v50 = vrot.slane %v3381_v58, 4 }
 0x345   : > { %v3408_v39 = vor.u32 %v3407_v37, %v3403_v45 }
 0x346   : > { %v3384_v62 = vor.u32 %v3383_v50, %v3379_v25  ;;  %v3399_v25 = vrot.slane %v3398_v18, 4  ;;  %v2996_v50 = vadd.f32 %v2995_v46, %v6287_v42  ;;  %v3002_v20 = vpop.f32.mrf.mxu2 }
 0x347   : > { %v3409_v14 = vrot.slane %v3408_v39, 4  ;;  %v3001_v39 = vadd.f32 %v6331_v2, %v6314_v35 }
 0x348   : > { %v3385_v34 = vrot.slane %v3384_v62, 4 }
 0x349   : > { %v2471_v17 = vpop.f32.mrf.mxu3 }
 0x34a   : > { %v6309_v8 = vadd.f32 %v2471_v17, %v6211_v36  ;;  %v3390_v33 = vsel %vm6290_vm12, %v3385_v34, %v3389_v43  ;;  %v6338_v23 = vpop.f32.mrf.mxu1  ;;  %v4461_v17 = vld [vmem:[%s5236_s30 + $0x38] sm:$0x1] }
 0x34b   : > { %v3554_v22 = vunpack.c.l.b16 %v3390_v33  ;;  %v3411_v58 = vshll.u32 %v4461_v17, 16  ;;  %v3435_v17 = vshll.u32 %v4464_v9, 16 }
 0x34d   : > { %v3568_v31 = vpack.c.b16 %v3554_v22, %v3553_v1  ;;  %v3413_v60 = vrot.slane %v3411_v58, 5  ;;  %v2998_v22 = vadd.f32 %v2997_v10, %v6304_v5 }
 0x34f   : > { %v3414_v34 = vsel %vm6290_vm12, %v3409_v14, %v3413_v60 }
 0x351   : > { %v3039_v36 = vpop.f32.mrf.mxu3 }
 0x352   : > { %v3040_v48 = vadd.f32 %v3039_v36, %v2991_v21  ;;  %v6351_v33 = vpop.f32.mrf.mxu1 }
 0x353   : > { %3644 = vmatmul.bf16.gmra.mxu1 %v3568_v31  ;;  %v4462_v31 = vld [vmem:[%s5236_s30 + $0x40] sm:$0xf] }
 0x354   : > { %v3079_v63 = vadd.f32 %v3040_v48, %v6176_v28  ;;  %v6336_v28 = vld [vmem:[%s6558_s6] ss:$0 sm:$0xff]  ;;  %v3556_v48 = vunpack.c.l.b16 %v3414_v34  ;;  %v3416_v53 = vshrl.u32 %v4462_v31, 16  ;;  %v3419_v15 = vshll.u32 %v4462_v31, 16 }
 0x355   : > { %v3003_v34 = vadd.f32 %v3002_v20, %v6338_v23  ;;  %v4467_v23 = vld [vmem:[%s5236_s30 + $0x58] sm:$0x1] }
 0x356   : > { %v3099_v52 = vmul.f32 %v6324_v13, %v3079_v63  ;;  %v3421_v32 = vrot.slane %v3419_v15, 5 }
 0x358   : > { %v3119_v30 = vadd.f32 %v6336_v28, %v3099_v52 }
 0x359   : > { %v3041_v38 = vpop.f32.mrf.mxu3 }
 0x35a   : > { %v3042_v61 = vadd.f32 %v3041_v38, %v2993_v0  ;;  %v3135_v62 = vmax.f32 %v3119_v30, 0.0  ;;  %v4463_v0 = vld [vmem:[%s5236_s30 + $0x44] sm:$0xf]  ;;  %v2958_v30 = vpop.f32.mrf.mxu1 }
 0x35b   : > { %v3425_v38 = vshll.u32 %v4463_v0, 16  ;;  %v3429_v54 = vshrl.u32 %v4463_v0, 16 }
 0x35c   : > { %v3080_v55 = vadd.f32 %v3042_v61, %v6183_v57  ;;  %v3404_v57 = vsel %vm6290_vm12, %v3399_v25, %v3403_v45  ;;  %v3005_v45 = vpop.f32.mrf.mxu2 }
 0x35d   : > { %v3555_v36 = vunpack.c.l.b16 %v3404_v57  ;;  %v3427_v51 = vrot.slane %v3425_v38, 5  ;;  %v3431_v61 = vrot.slane %v3429_v54, 4 }
 0x35e   : > { %v3100_v26 = vmul.f32 %v6324_v13, %v3080_v55 }
 0x35f   : > { %v3569_v1 = vpack.c.b16 %v3556_v48, %v3555_v36  ;;  %v3432_v55 = vor.u32 %v3431_v61, %v3427_v51  ;;  %v4465_v48 = vld [vmem:[%s5236_s30 + $0x50] sm:$0xf] }
 0x360   : > { %v3120_v11 = vadd.f32 %v6336_v28, %v3100_v26  ;;  %v3437_v26 = vrot.slane %v3435_v17, 5 }
 0x361   : > { %v3044_v6 = vpop.f32.mrf.mxu3  ;;  %v3433_v58 = vrot.slane %v3432_v55, 4 }
 0x362   : > { %v3136_v43 = vmax.f32 %v3120_v11, 0.0  ;;  %v3045_v21 = vadd.f32 %v3044_v6, %v2996_v50 }
 0x363   : > { %3649 = vmatmul.bf16.gmra.mxu1 %v3569_v1  ;;  %v3438_v11 = vsel %vm6290_vm12, %v3433_v58, %v3437_v26 }
 0x364   : > { %v3081_v42 = vadd.f32 %v3045_v21, %v6196_v16  ;;  %v3151_v46 = vpack.c.bf16 %v3136_v43, %v3135_v62  ;;  %v3418_v16 = vrot.slane %v3416_v53, 4  ;;  %v3558_v57 = vunpack.c.l.b16 %v3438_v11  ;;  %v3007_v2 = vpop.f32.mrf.mxu2 }
 0x366   : > { %3231 = vmatmul.bf16.vlgmr.msrb.gmra.mxu0 %v3151_v46  ;;  %v3101_v63 = vmul.f32 %v6324_v13, %v3081_v42  ;;  %v3422_v10 = vor.u32 %v3421_v32, %v3418_v16  ;;  %v4466_v42 = vld [vmem:[%s5236_s30 + $0x54] sm:$0xf]  ;;  %v6373_v46 = vpop.f32.mrf.mxu1  ;;  %v3459_v32 = vshll.u32 %v4467_v23, 16 }
 0x367   : > { %v3449_v31 = vshll.u32 %v4466_v42, 16  ;;  %v3453_v0 = vshrl.u32 %v4466_v42, 16 }
 0x368   : > { %v3121_v5 = vadd.f32 %v6336_v28, %v3101_v63  ;;  %v3423_v18 = vrot.slane %v3422_v10, 4  ;;  %v3443_v63 = vshll.u32 %v4465_v48, 16  ;;  %v3461_v9 = vrot.slane %v3459_v32, 5 }
 0x369   : > { %v3046_v52 = vpop.f32.mrf.mxu3  ;;  %v3451_v15 = vrot.slane %v3449_v31, 5  ;;  %v3455_v38 = vrot.slane %v3453_v0, 4 }
 0x36a   : > { %v3047_v59 = vadd.f32 %v3046_v52, %v2998_v22  ;;  %v3428_v50 = vsel %vm6290_vm12, %v3423_v18, %v3427_v51  ;;  %v3440_v22 = vshrl.u32 %v4465_v48, 16  ;;  %v3445_v53 = vrot.slane %v3443_v63, 5  ;;  %v4470_v63 = vld [vmem:[%s5236_s30 + $0x68] sm:$0x1] }
 0x36b   : > { %v3557_v6 = vunpack.c.l.b16 %v3428_v50  ;;  %v3456_v16 = vor.u32 %v3455_v38, %v3451_v15  ;;  %v3008_v50 = vadd.f32 %v3007_v2, %v2958_v30 }
 0x36c   : > { %v3082_v24 = vadd.f32 %v3047_v59, %v6209_v3  ;;  %v3137_v3 = vmax.f32 %v3121_v5, 0.0  ;;  %v3442_v52 = vrot.slane %v3440_v22, 4  ;;  %v3006_v5 = vadd.f32 %v3005_v45, %v6351_v33  ;;  %v3010_v55 = vpop.f32.mrf.mxu2 }
 0x36d   : > { %v3570_v35 = vpack.c.b16 %v3558_v57, %v3557_v6 }
 0x36e   : > { %v3102_v37 = vmul.f32 %v6324_v13, %v3082_v24  ;;  %v3446_v59 = vor.u32 %v3445_v53, %v3442_v52  ;;  %v3457_v24 = vrot.slane %v3456_v16, 4 }
 0x370   : > { %v3122_v25 = vadd.f32 %v6336_v28, %v3102_v37  ;;  %v3447_v61 = vrot.slane %v3446_v59, 4  ;;  %v3462_v18 = vsel %vm6290_vm12, %v3457_v24, %v3461_v9 }
 0x371   : > { %v3049_v60 = vpop.f32.mrf.mxu3 }
 0x372   : > { %v3050_v14 = vadd.f32 %v3049_v60, %v3001_v39  ;;  %v3138_v62 = vmax.f32 %v3122_v25, 0.0  ;;  %v3560_v25 = vunpack.c.l.b16 %v3462_v18  ;;  %v2963_v60 = vpop.f32.mrf.mxu1  ;;  %v4472_v18 = vld [vmem:[%s5236_s30 + $0x74] sm:$0xf] }
 0x373   : > { %3654 = vmatmul.bf16.gmra.mxu1 %v3570_v35 }
 0x374   : > { %v3083_v43 = vadd.f32 %v3050_v14, %v6218_v47  ;;  %v3152_v21 = vpack.c.bf16 %v3138_v62, %v3137_v3  ;;  %v4468_v14 = vld [vmem:[%s5236_s30 + $0x60] sm:$0xf]  ;;  %v4469_v62 = vld [vmem:[%s5236_s30 + $0x64] sm:$0xf] }
 0x375   : > { %v3464_v57 = vshrl.u32 %v4468_v14, 16  ;;  %v3477_v35 = vshrl.u32 %v4469_v62, 16 }
 0x376   : > { %3236 = vmatmul.bf16.gmra.mxu0 %v3152_v21  ;;  %v3103_v36 = vmul.f32 %v6324_v13, %v3083_v43  ;;  %v3467_v43 = vshll.u32 %v4468_v14, 16  ;;  %v3473_v21 = vshll.u32 %v4469_v62, 16  ;;  %v4473_v62 = vld [vmem:[%s5236_s30 + $0x78] sm:$0x1] }
 0x377   : > { %v3466_v48 = vrot.slane %v3464_v57, 4 }
 0x378   : > { %v3123_v20 = vadd.f32 %v6336_v28, %v3103_v36  ;;  %v3012_v36 = vpop.f32.mrf.mxu2  ;;  %v3469_v42 = vrot.slane %v3467_v43, 5  ;;  %v3507_v43 = vshll.u32 %v4473_v62, 16 }
 0x379   : > { %v3051_v1 = vpop.f32.mrf.mxu3 }
 0x37a   : > { %v3052_v47 = vadd.f32 %v3051_v1, %v3003_v34  ;;  %v3139_v37 = vmax.f32 %v3123_v20, 0.0  ;;  %v3479_v1 = vrot.slane %v3477_v35, 4  ;;  %v2966_v30 = vpop.f32.mrf.mxu1  ;;  %v3470_v31 = vor.u32 %v3469_v42, %v3466_v48 }
 0x37b   : > { %v3509_v48 = vrot.slane %v3507_v43, 5 }
 0x37c   : > { %v3084_v54 = vadd.f32 %v3052_v47, %v6222_v4  ;;  %v3452_v4 = vsel %vm6290_vm12, %v3447_v61, %v3451_v15  ;;  %v3483_v47 = vshll.u32 %v4470_v63, 16  ;;  %v3471_v53 = vrot.slane %v3470_v31, 4 }
 0x37d   : > { %v3559_v39 = vunpack.c.l.b16 %v3452_v4  ;;  %v4471_v4 = vld [vmem:[%s5236_s30 + $0x70] sm:$0xf] }
 0x37e   : > { %v3104_v51 = vmul.f32 %v6324_v13, %v3084_v54  ;;  %v3485_v38 = vrot.slane %v3483_v47, 5  ;;  %v3011_v54 = vadd.f32 %v3010_v55, %v6373_v46 }
 0x37f   : > { %v3571_v3 = vpack.c.b16 %v3560_v25, %v3559_v39  ;;  %v3491_v39 = vshll.u32 %v4471_v4, 16  ;;  %v3497_v25 = vshll.u32 %v4472_v18, 16 }
 0x380   : > { %v3124_v10 = vadd.f32 %v6336_v28, %v3104_v51 }
 0x381   : > { %v3054_v17 = vpop.f32.mrf.mxu3 }
 0x382   : > { %v3055_v58 = vadd.f32 %v3054_v17, %v3006_v5  ;;  %v3140_v26 = vmax.f32 %v3124_v10, 0.0  ;;  %v3015_v10 = vpop.f32.mrf.mxu2  ;;  %v2968_v55 = vpop.f32.mrf.mxu1  ;;  %v3013_v17 = vadd.f32 %v3012_v36, %v2963_v60 }
 0x383   : > { %3659 = vmatmul.bf16.gmra.mxu1 %v3571_v3  ;;  %v3016_v42 = vadd.f32 %v3015_v10, %v2966_v30 }
 0x384   : > { %v3085_v33 = vadd.f32 %v3055_v58, %v6229_v41  ;;  %v3153_v45 = vpack.c.bf16 %v3140_v26, %v3139_v37  ;;  %v3475_v41 = vrot.slane %v3473_v21, 5  ;;  %v3488_v26 = vshrl.u32 %v4471_v4, 16 }
 0x386   : > { %3241 = vmatmul.bf16.gmra.mxu0 %v3153_v45  ;;  %v3105_v11 = vmul.f32 %v6324_v13, %v3085_v33  ;;  %v3480_v0 = vor.u32 %v3479_v1, %v3475_v41  ;;  %v3501_v33 = vshrl.u32 %v4472_v18, 16  ;;  %v3490_v3 = vrot.slane %v3488_v26, 4 }
 0x388   : > { %v3125_v2 = vadd.f32 %v6336_v28, %v3105_v11  ;;  %v3481_v15 = vrot.slane %v3480_v0, 4  ;;  %v3503_v11 = vrot.slane %v3501_v33, 4 }
 0x389   : > { %v3056_v6 = vpop.f32.mrf.mxu3 }
 0x38a   : > { %v3057_v34 = vadd.f32 %v3056_v6, %v3008_v50  ;;  %v3141_v59 = vmax.f32 %v3125_v2, 0.0  ;;  %v3486_v16 = vsel %vm6290_vm12, %v3481_v15, %v3485_v38  ;;  %v3499_v50 = vrot.slane %v3497_v25, 5  ;;  %v3017_v35 = vpop.f32.mrf.mxu2  ;;  %v2971_v1 = vpop.f32.mrf.mxu1 }
 0x38b   : > { %v3562_v24 = vunpack.c.l.b16 %v3486_v16  ;;  %v3018_v38 = vadd.f32 %v3017_v35, %v2968_v55  ;;  %v4476_v55 = vld [vmem:[%s5236_s30 + $0x88] sm:$0x1] }
 0x38c   : > { %v3086_v22 = vadd.f32 %v3057_v34, %v6233_v12  ;;  %v3476_v12 = vsel %vm6290_vm12, %v3471_v53, %v3475_v41  ;;  %v3504_v57 = vor.u32 %v3503_v11, %v3499_v50 }
 0x38d   : > { %v3561_v61 = vunpack.c.l.b16 %v3476_v12 }
 0x38e   : > { %v3106_v52 = vmul.f32 %v6324_v13, %v3086_v22  ;;  %v3505_v36 = vrot.slane %v3504_v57, 4 }
 0x38f   : > { %v3572_v46 = vpack.c.b16 %v3562_v24, %v3561_v61 }
 0x390   : > { %v3126_v23 = vadd.f32 %v6336_v28, %v3106_v52  ;;  %v3510_v2 = vsel %vm6290_vm12, %v3505_v36, %v3509_v48 }
 0x391   : > { %v3059_v20 = vpop.f32.mrf.mxu3  ;;  %v3564_v52 = vunpack.c.l.b16 %v3510_v2 }
 0x392   : > { %v3060_v32 = vadd.f32 %v3059_v20, %v3011_v54  ;;  %v3142_v51 = vmax.f32 %v3126_v23, 0.0  ;;  %v4474_v23 = vld [vmem:[%s5236_s30 + $0x80] sm:$0xf]  ;;  %v4475_v20 = vld [vmem:[%s5236_s30 + $0x84] sm:$0xf] }
 0x393   : > { %3664 = vmatmul.bf16.gmra.mxu1 %v3572_v46  ;;  %v3512_v16 = vshrl.u32 %v4474_v23, 16  ;;  %v3525_v61 = vshrl.u32 %v4475_v20, 16 }
 0x394   : > { %v3087_v9 = vadd.f32 %v3060_v32, %v6243_v44  ;;  %v3154_v5 = vpack.c.bf16 %v3142_v51, %v3141_v59  ;;  %v3493_v44 = vrot.slane %v3491_v39, 5  ;;  %v3020_v59 = vpop.f32.mrf.mxu2  ;;  %v3515_v32 = vshll.u32 %v4474_v23, 16 }
 0x395   : > { %v3521_v51 = vshll.u32 %v4475_v20, 16  ;;  %v3527_v10 = vrot.slane %v3525_v61, 4 }
 0x396   : > { %3246 = vmatmul.bf16.gmra.mxu0 %v3154_v5  ;;  %v3107_v37 = vmul.f32 %v6324_v13, %v3087_v9  ;;  %v3494_v60 = vor.u32 %v3493_v44, %v3490_v3  ;;  %v2973_v9 = vpop.f32.mrf.mxu1  ;;  %v3514_v5 = vrot.slane %v3512_v16, 4 }
 0x397   : > { %v3523_v46 = vrot.slane %v3521_v51, 5 }
 0x398   : > { %v3127_v6 = vadd.f32 %v6336_v28, %v3107_v37  ;;  %v3495_v34 = vrot.slane %v3494_v60, 4 }
 0x399   : > { %v3061_v58 = vpop.f32.mrf.mxu3  ;;  %v3528_v18 = vor.u32 %v3527_v10, %v3523_v46 }
 0x39a   : > { %v3062_v45 = vadd.f32 %v3061_v58, %v3013_v17  ;;  %v3500_v63 = vsel %vm6290_vm12, %v3495_v34, %v3499_v50  ;;  %v3531_v58 = vshll.u32 %v4476_v55, 16 }
 0x39b   : > { %v3563_v47 = vunpack.c.l.b16 %v3500_v63  ;;  %v3529_v25 = vrot.slane %v3528_v18, 4 }
 0x39c   : > { %v3088_v14 = vadd.f32 %v3062_v45, %v6249_v49  ;;  %v3143_v49 = vmax.f32 %v3127_v6, 0.0  ;;  %v3533_v33 = vrot.slane %v3531_v58, 5  ;;  %v3021_v45 = vadd.f32 %v3020_v59, %v2971_v1  ;;  %v3022_v57 = vpop.f32.mrf.mxu2 }
 0x39d   : > { %v3573_v15 = vpack.c.b16 %v3564_v52, %v3563_v47  ;;  %v3023_v36 = vadd.f32 %v3022_v57, %v2973_v9 }
 0x39e   : > { %v3108_v21 = vmul.f32 %v6324_v13, %v3088_v14  ;;  %v2976_v43 = vpop.f32.mrf.mxu1 }
 0x3a0   : > { %v3128_v41 = vadd.f32 %v6336_v28, %v3108_v21 }
 0x3a1   : > { %v3064_v22 = vpop.f32.mrf.mxu3 }
 0x3a2   : > { %v3065_v31 = vadd.f32 %v3064_v22, %v3016_v42  ;;  %v3144_v0 = vmax.f32 %v3128_v41, 0.0 }
 0x3a3   : > { %3669 = vmatmul.bf16.gmra.mxu1 %v3573_v15 }
 0x3a4   : > { %v3089_v53 = vadd.f32 %v3065_v31, %v6256_v56  ;;  %v3155_v30 = vpack.c.bf16 %v3144_v0, %v3143_v49  ;;  %v3517_v56 = vrot.slane %v3515_v32, 5  ;;  %v3025_v1 = vpop.f32.mrf.mxu2 }
 0x3a5   : > { %v3026_v2 = vadd.f32 %v3025_v1, %v2976_v43 }
 0x3a6   : > { %3251 = vmatmul.bf16.gmra.mxu0 %v3155_v30  ;;  %v3109_v54 = vmul.f32 %v6324_v13, %v3089_v53  ;;  %v3518_v4 = vor.u32 %v3517_v56, %v3514_v5  ;;  %v2978_v22 = vpop.f32.mrf.mxu1  ;;  %v6440_v5 = vld [vmem:[%s6563_s11] ss:$0 sm:$0xff] }
 0x3a8   : > { %v3129_v37 = vadd.f32 %v6336_v28, %v3109_v54  ;;  %v3519_v39 = vrot.slane %v3518_v4, 4 }
 0x3a9   : > { %v3066_v12 = vpop.f32.mrf.mxu3 }
 0x3aa   : > { %v3067_v24 = vadd.f32 %v3066_v12, %v3018_v38  ;;  %v3145_v50 = vmax.f32 %v3129_v37, 0.0  ;;  %v3524_v11 = vsel %vm6290_vm12, %v3519_v39, %v3523_v46  ;;  %v6452_v46 = vld [vmem:[%s6564_s12] ss:$0 sm:$0xff] }
 0x3ab   : > { %v3565_v6 = vunpack.c.l.b16 %v3524_v11 }
 0x3ac   : > { %v3090_v17 = vadd.f32 %v3067_v24, %v6262_v40  ;;  %v3534_v40 = vsel %vm6290_vm12, %v3529_v25, %v3533_v33  ;;  %v3027_v30 = vpop.f32.mrf.mxu2 }
 0x3ad   : > { %v3566_v60 = vunpack.c.l.b16 %v3534_v40  ;;  %v3028_v54 = vadd.f32 %v3027_v30, %v2978_v22 }
 0x3ae   : > { %v3110_v26 = vmul.f32 %v6324_v13, %v3090_v17  ;;  %v6458_v17 = vld [vmem:[%s6561_s9] ss:$0 sm:$0xff] }
 0x3af   : > { %v3574_v35 = vpack.c.b16 %v3566_v60, %v3565_v6 }
 0x3b0   : > { %v3130_v3 = vadd.f32 %v6336_v28, %v3110_v26 }
 0x3b1   : > { %v3069_v44 = vpop.f32.mrf.mxu3 }
 0x3b2   : > { %v3070_v14 = vadd.f32 %v3069_v44, %v3021_v45  ;;  %v3146_v62 = vmax.f32 %v3130_v3, 0.0 }
 0x3b3   : > { %3674 = vmatmul.bf16.gmra.mxu1 %v3574_v35 }
 0x3b4   : > { %v3156_v21 = vpack.c.bf16 %v3146_v62, %v3145_v50  ;;  %v3091_v34 = vadd.f32 %v3070_v14, %v6271_v7 }
 0x3b6   : > { %3256 = vmatmul.bf16.gmra.mxu0 %v3156_v21  ;;  %v3111_v42 = vmul.f32 %v6324_v13, %v3091_v34 }
 0x3b8   : > { %v3131_v63 = vadd.f32 %v6336_v28, %v3111_v42 }
 0x3b9   : > { %v3071_v48 = vpop.f32.mrf.mxu3 }
 0x3ba   : > { %v3072_v41 = vadd.f32 %v3071_v48, %v3023_v36  ;;  %v3147_v47 = vmax.f32 %v3131_v63, 0.0 }
 0x3bc   : > { %v3092_v29 = vadd.f32 %v3072_v41, %v6279_v27 }
 0x3be   : > { %v3112_v49 = vmul.f32 %v6324_v13, %v3092_v29 }
 0x3c0   : > { %v3132_v31 = vadd.f32 %v6336_v28, %v3112_v49  ;;  %v3640_v15 = vpop.f32.mrf.mxu1 }
 0x3c1   : > { %v3074_v0 = vpop.f32.mrf.mxu3 }
 0x3c2   : > { %v3075_v7 = vadd.f32 %v3074_v0, %v3026_v2  ;;  %v3148_v52 = vmax.f32 %v3132_v31, 0.0 }
 0x3c4   : > { %v3157_v53 = vpack.c.bf16 %v3148_v52, %v3147_v47  ;;  %v3093_v38 = vadd.f32 %v3075_v7, %v6300_v19 }
 0x3c6   : > { %3261 = vmatmul.bf16.gmra.mxu0 %v3157_v53  ;;  %v3113_v23 = vmul.f32 %v6324_v13, %v3093_v38 }
 0x3c8   : > { %v3133_v12 = vadd.f32 %v6336_v28, %v3113_v23  ;;  %v3642_v32 = vpop.f32.mrf.mxu1 }
 0x3c9   : > { %v3076_v27 = vpop.f32.mrf.mxu3  ;;  %v3685_v4 = vmul.f32 %v6440_v5, %v3642_v32 }
 0x3ca   : > { %v3077_v20 = vadd.f32 %v3076_v27, %v3028_v54  ;;  %v3149_v61 = vmax.f32 %v3133_v12, 0.0 }
 0x3cb   : > { %v3705_v25 = vadd.f32 %v6452_v46, %v3685_v4 }
 0x3cc   : > { %v3094_v59 = vadd.f32 %v3077_v20, %v6309_v8  ;;  %v6445_v8 = vld [vmem:[%s6560_s8] ss:$0 sm:$0xff] }
 0x3ce   : > { %v3114_v16 = vmul.f32 %v6324_v13, %v3094_v59 }
 0x3d0   : > { %v3134_v51 = vadd.f32 %v6336_v28, %v3114_v16  ;;  %v3645_v9 = vpop.f32.mrf.mxu1  ;;  %v3684_v28 = vmul.f32 %v6440_v5, %v3640_v15 }
 0x3d1   : > { %v3686_v40 = vmul.f32 %v6440_v5, %v3645_v9 }
 0x3d2   : > { %v3150_v24 = vmax.f32 %v3134_v51, 0.0  ;;  %v3704_v55 = vadd.f32 %v6452_v46, %v3684_v28 }
 0x3d3   : > { %v3706_v6 = vadd.f32 %v6452_v46, %v3686_v40 }
 0x3d4   : > { %v3158_v19 = vpack.c.bf16 %v3150_v24, %v3149_v61 }
 0x3d6   : > { %3266 = vmatmul.bf16.vlgmr.msra.gmra.mxu2 %v3158_v19 }
 0x3d8   : > { %v3647_v56 = vpop.f32.mrf.mxu1 }
 0x3d9   : > { %v3687_v57 = vmul.f32 %v6440_v5, %v3647_v56 }
 0x3db   : > { %v3707_v34 = vadd.f32 %v6452_v46, %v3687_v57 }
 0x3e0   : > { %v3650_v26 = vpop.f32.mrf.mxu1 }
 0x3e1   : > { %v3688_v49 = vmul.f32 %v6440_v5, %v3650_v26 }
 0x3e3   : > { %v3232_v13 = vpop.f32.mrf.mxu0  ;;  %v3708_v2 = vadd.f32 %v6452_v46, %v3688_v49 }
 0x3e4   : > { %v3276_v10 = vmul.f32 %v6445_v8, %v3232_v13 }
 0x3e6   : > { %v3296_v37 = vadd.f32 %v6458_v17, %v3276_v10 }
 0x3e8   : > { %v3720_v39 = vadd.f32 %v3704_v55, %v3296_v37  ;;  %v3652_v62 = vpop.f32.mrf.mxu1 }
 0x3e9   : > { %v3689_v0 = vmul.f32 %v6440_v5, %v3652_v62 }
 0x3ea   : > { %v3736_v3 = vmax.f32 %v3720_v39, 0.0 }
 0x3eb   : > { %v3234_v18 = vpop.f32.mrf.mxu0  ;;  %v3709_v30 = vadd.f32 %v6452_v46, %v3689_v0 }
 0x3ec   : > { %v3277_v58 = vmul.f32 %v6445_v8, %v3234_v18 }
 0x3ee   : > { %v3297_v33 = vadd.f32 %v6458_v17, %v3277_v58 }
 0x3f0   : > { %v3721_v45 = vadd.f32 %v3705_v25, %v3297_v33  ;;  %v3655_v42 = vpop.f32.mrf.mxu1 }
 0x3f1   : > { %v3690_v12 = vmul.f32 %v6440_v5, %v3655_v42 }
 0x3f2   : > { %v3737_v44 = vmax.f32 %v3721_v45, 0.0 }
 0x3f3   : > { %v3237_v50 = vpop.f32.mrf.mxu0  ;;  %v3710_v32 = vadd.f32 %v6452_v46, %v3690_v12 }
 0x3f4   : > { %v4829_v11 = vpack.c.bf16 %v3737_v44, %v3736_v3  ;;  %v3278_v14 = vmul.f32 %v6445_v8, %v3237_v50 }
 0x3f6   : > { %4830 = vst [vmem:[%s6471_s16] sm:$0xff] %v4829_v11   ;;  %v3298_v60 = vadd.f32 %v6458_v17, %v3278_v14 }
 0x3f8   : > { %v3722_v35 = vadd.f32 %v3706_v6, %v3298_v60  ;;  %v3657_v47 = vpop.f32.mrf.mxu1 }
 0x3f9   : > { %v3691_v61 = vmul.f32 %v6440_v5, %v3657_v47 }
 0x3fa   : > { %v3738_v41 = vmax.f32 %v3722_v35, 0.0 }
 0x3fb   : > { %v3239_v43 = vpop.f32.mrf.mxu0  ;;  %v3711_v13 = vadd.f32 %v6452_v46, %v3691_v61 }
 0x3fc   : > { %v3279_v21 = vmul.f32 %v6445_v8, %v3239_v43 }
 0x3fe   : > { %v3299_v36 = vadd.f32 %v6458_v17, %v3279_v21 }
 0x400   : > { %v3723_v48 = vadd.f32 %v3707_v34, %v3299_v36  ;;  %v3660_v59 = vpop.f32.mrf.mxu1 }
 0x401   : > { %v3692_v58 = vmul.f32 %v6440_v5, %v3660_v59 }
 0x402   : > { %v3739_v1 = vmax.f32 %v3723_v48, 0.0 }
 0x403   : > { %v3242_v29 = vpop.f32.mrf.mxu0  ;;  %v3712_v25 = vadd.f32 %v6452_v46, %v3692_v58 }
 0x404   : > { %v4834_v22 = vpack.c.bf16 %v3739_v1, %v3738_v41  ;;  %v3280_v63 = vmul.f32 %v6445_v8, %v3242_v29 }
 0x406   : > { %4978 = vst [vmem:[%s6471_s16 + $0x8] sm:$0xff] %v4834_v22   ;;  %v3300_v31 = vadd.f32 %v6458_v17, %v3280_v63 }
 0x408   : > { %v3724_v53 = vadd.f32 %v3708_v2, %v3300_v31  ;;  %v3662_v28 = vpop.f32.mrf.mxu1 }
 0x409   : > { %v3693_v45 = vmul.f32 %v6440_v5, %v3662_v28 }
 0x40a   : > { %v3740_v54 = vmax.f32 %v3724_v53, 0.0 }
 0x40b   : > { %v3244_v7 = vpop.f32.mrf.mxu0  ;;  %v3713_v11 = vadd.f32 %v6452_v46, %v3693_v45 }
 0x40c   : > { %v3281_v52 = vmul.f32 %v6445_v8, %v3244_v7 }
 0x40e   : > { %v3301_v15 = vadd.f32 %v6458_v17, %v3281_v52 }
 0x410   : > { %v3725_v38 = vadd.f32 %v3709_v30, %v3301_v15  ;;  %v3665_v39 = vpop.f32.mrf.mxu1 }
 0x411   : > { %v3694_v21 = vmul.f32 %v6440_v5, %v3665_v39 }
 0x412   : > { %v3741_v27 = vmax.f32 %v3725_v38, 0.0 }
 0x413   : > { %v3247_v23 = vpop.f32.mrf.mxu0  ;;  %v3714_v34 = vadd.f32 %v6452_v46, %v3694_v21 }
 0x414   : > { %v4839_v20 = vpack.c.bf16 %v3741_v27, %v3740_v54  ;;  %v3282_v16 = vmul.f32 %v6445_v8, %v3247_v23 }
 0x416   : > { %4979 = vst [vmem:[%s6471_s16 + $0x10] sm:$0xff] %v4839_v20   ;;  %v3302_v51 = vadd.f32 %v6458_v17, %v3282_v16 }
 0x418   : > { %v3726_v9 = vadd.f32 %v3710_v32, %v3302_v51  ;;  %v3667_v57 = vpop.f32.mrf.mxu1 }
 0x419   : > { %v3695_v48 = vmul.f32 %v6440_v5, %v3667_v57 }
 0x41a   : > { %v3742_v55 = vmax.f32 %v3726_v9, 0.0 }
 0x41b   : > { %v3249_v24 = vpop.f32.mrf.mxu0  ;;  %v3715_v22 = vadd.f32 %v6452_v46, %v3695_v48 }
 0x41c   : > { %v3283_v19 = vmul.f32 %v6445_v8, %v3249_v24 }
 0x41e   : > { %v3303_v56 = vadd.f32 %v6458_v17, %v3283_v19 }
 0x420   : > { %v3727_v10 = vadd.f32 %v3711_v13, %v3303_v56  ;;  %v3670_v1 = vpop.f32.mrf.mxu1 }
 0x421   : > { %v3696_v47 = vmul.f32 %v6440_v5, %v3670_v1 }
 0x422   : > { %v3743_v37 = vmax.f32 %v3727_v10, 0.0 }
 0x423   : > { %v3252_v4 = vpop.f32.mrf.mxu0  ;;  %v3716_v30 = vadd.f32 %v6452_v46, %v3696_v47 }
 0x424   : > { %v4844_v18 = vpack.c.bf16 %v3743_v37, %v3742_v55  ;;  %v3284_v26 = vmul.f32 %v6445_v8, %v3252_v4 }
 0x426   : > { %4980 = vst [vmem:[%s6471_s16 + $0x18] sm:$0xff] %v4844_v18   ;;  %v3304_v33 = vadd.f32 %v6458_v17, %v3284_v26 }
 0x428   : > { %v3728_v50 = vadd.f32 %v3712_v25, %v3304_v33  ;;  %v3672_v53 = vpop.f32.mrf.mxu1 }
 0x429   : > { %v3697_v38 = vmul.f32 %v6440_v5, %v3672_v53 }
 0x42a   : > { %v3744_v62 = vmax.f32 %v3728_v50, 0.0 }
 0x42b   : > { %v3254_v3 = vpop.f32.mrf.mxu0  ;;  %v3717_v20 = vadd.f32 %v6452_v46, %v3697_v38 }
 0x42c   : > { %v3285_v44 = vmul.f32 %v6445_v8, %v3254_v3 }
 0x42e   : > { %v3305_v40 = vadd.f32 %v6458_v17, %v3285_v44 }
 0x430   : > { %v3729_v14 = vadd.f32 %v3713_v11, %v3305_v40  ;;  %v3675_v51 = vpop.f32.mrf.mxu1 }
 0x431   : > { %v3698_v19 = vmul.f32 %v6440_v5, %v3675_v51 }
 0x432   : > { %v3745_v6 = vmax.f32 %v3729_v14, 0.0 }
 0x433   : > { %v3257_v60 = vpop.f32.mrf.mxu0  ;;  %v3718_v56 = vadd.f32 %v6452_v46, %v3698_v19 }
 0x434   : > { %v4849_v43 = vpack.c.bf16 %v3745_v6, %v3744_v62  ;;  %v3286_v35 = vmul.f32 %v6445_v8, %v3257_v60 }
 0x436   : > { %4981 = vst [vmem:[%s6471_s16 + $0x20] sm:$0xff] %v4849_v43   ;;  %v3306_v36 = vadd.f32 %v6458_v17, %v3286_v35 }
 0x438   : > { %v3730_v29 = vadd.f32 %v3714_v34, %v3306_v36  ;;  %v3677_v13 = vpop.f32.mrf.mxu1 }
 0x439   : > { %v3699_v10 = vmul.f32 %v6440_v5, %v3677_v13 }
 0x43a   : > { %v3746_v2 = vmax.f32 %v3730_v29, 0.0 }
 0x43b   : > { %v3259_v42 = vpop.f32.mrf.mxu0  ;;  %v3719_v18 = vadd.f32 %v6452_v46, %v3699_v10 }
 0x43c   : > { %v3287_v41 = vmul.f32 %v6445_v8, %v3259_v42 }
 0x43e   : > { %v3307_v49 = vadd.f32 %v6458_v17, %v3287_v41 }
 0x440   : > { %v3731_v63 = vadd.f32 %v3715_v22, %v3307_v49 }
 0x442   : > { %v3747_v31 = vmax.f32 %v3731_v63, 0.0 }
 0x443   : > { %v3262_v0 = vpop.f32.mrf.mxu0 }
 0x444   : > { %v4854_v7 = vpack.c.bf16 %v3747_v31, %v3746_v2  ;;  %v3288_v52 = vmul.f32 %v6445_v8, %v3262_v0 }
 0x446   : > { %4982 = vst [vmem:[%s6471_s16 + $0x28] sm:$0xff] %v4854_v7   ;;  %v3308_v15 = vadd.f32 %v6458_v17, %v3288_v52 }
 0x448   : > { %v3732_v23 = vadd.f32 %v3716_v30, %v3308_v15 }
 0x44a   : > { %v3748_v16 = vmax.f32 %v3732_v23, 0.0 }
 0x44b   : > { %v3264_v54 = vpop.f32.mrf.mxu0 }
 0x44c   : > { %v3289_v27 = vmul.f32 %v6445_v8, %v3264_v54 }
 0x44e   : > { %v3309_v59 = vadd.f32 %v6458_v17, %v3289_v27 }
 0x450   : > { %v3733_v12 = vadd.f32 %v3717_v20, %v3309_v59 }
 0x452   : > { %v3749_v32 = vmax.f32 %v3733_v12, 0.0 }
 0x454   : > { %v4859_v61 = vpack.c.bf16 %v3749_v32, %v3748_v16 }
 0x456   : > { %4983 = vst [vmem:[%s6471_s16 + $0x30] sm:$0xff] %v4859_v61  }
 0x459   : > { %v3267_v24 = vpop.f32.mrf.mxu2 }
 0x45a   : > { %v3290_v9 = vmul.f32 %v6445_v8, %v3267_v24 }
 0x45c   : > { %v3310_v28 = vadd.f32 %v6458_v17, %v3290_v9 }
 0x45e   : > { %v3734_v4 = vadd.f32 %v3718_v56, %v3310_v28 }
 0x460   : > { %v3750_v39 = vmax.f32 %v3734_v4, 0.0 }
 0x461   : > { %v3269_v55 = vpop.f32.mrf.mxu2 }
 0x462   : > { %v3291_v37 = vmul.f32 %v6445_v8, %v3269_v55 }
 0x464   : > { %v3311_v58 = vadd.f32 %v6458_v17, %v3291_v37 }
 0x466   : > { %v3735_v26 = vadd.f32 %v3719_v18, %v3311_v58 }
 0x468   : > { %v3751_v25 = vmax.f32 %v3735_v26, 0.0 }
 0x46a   : > { %v4864_v33 = vpack.c.bf16 %v3751_v25, %v3750_v39 }
 0x46c   : > { %4984 = vst [vmem:[%s6471_s16 + $0x38] sm:$0xff] %v4864_v33  }
 0x46d PF: > { %s23_s29 = sadd.s32 1, %s5100_s29   ;;  %s6599_s20 = sld [smem:[#allocation3_spill]] }
 0x46e   : > { %p20_p7 = scmp.ge.s32.totalorder %s23_s29, 6   ;;  %s6600_s17 = sld [smem:[#allocation4_spill]] }
 0x46f   : > { %s6601_s25 = smov %s5092_s27  ;;  %s6602_s26 = smov %s5096_s28 }
 0x470   :  { %22 = sbr.rel (!%p20_p7) target bundleno = 3 (0x3), region = 108 }
 0x473   : > { %s6603_s27 = smov %s6599_s20 }
 0x474   : > { %s6604_s28 = smov %s6600_s17 }

</bundles_post_ra>
